<compile_context>
chip_gen: v5e
topology: v5e:2x2
jax: 0.10.0
libtpu: 0.0.40
codegen_flags: <defaults>
</compile_context>

<pallas_src>
import functools
import math
import numpy as np
import jax
import jax.numpy as jnp
from jax import lax
from jax.experimental import pallas as pl
from jax.experimental.pallas import tpu as pltpu

JITTER = 1e-4


def _gp_vfe_kernel(kmn_ref, vec_ref, a_ref, cy_ref, red_ref, red_acc,
                   *, n_valid, tn, j_per_core, need_mask):
    """Grid = (B, S, J_per_core); the last axis is the N-reduction axis.

    Refs (leading size-1 grid dims squeezed away):
      kmn_ref : (M, TN)   K_mn tile (tail lanes may be garbage -> masked)
      vec_ref : (3, TN)   rows = [y - mean, var, K_nn_diag]
      a_ref   : (M, M)    accumulator: C @ K_mn^T
      cy_ref  : (1, M)    accumulator: (C @ y_c)^T
      red_ref : (3, 128)  final [sum y_c^2/var, sum log var, sum knn/var]
      red_acc : (3, TN)   VMEM scratch, per-lane partial sums
    """
    j = pl.program_id(2)

    @pl.when(j == 0)
    def _init():
        a_ref[...] = jnp.zeros_like(a_ref)
        cy_ref[...] = jnp.zeros_like(cy_ref)
        red_acc[...] = jnp.zeros_like(red_acc)

    kmn = kmn_ref[...]                       # (M, TN)
    y_c = vec_ref[0:1, :]                    # (1, TN)
    var = vec_ref[1:2, :]                    # (1, TN)
    knn = vec_ref[2:3, :]                    # (1, TN)

    if need_mask:
        # Ragged tail (or duplicated phantom block from the core split):
        # force neutral values so out-of-range lanes contribute exactly zero.
        c = pl.program_id(1)
        blk = c * j_per_core + j
        lane = lax.broadcasted_iota(jnp.int32, (1, tn), 1)
        valid = (blk * tn + lane) < n_valid
        kmn = jnp.where(valid, kmn, 0.0)
        y_c = jnp.where(valid, y_c, 0.0)
        knn = jnp.where(valid, knn, 0.0)
        var = jnp.where(valid, var, 1.0)

    var_inv = pl.reciprocal(var)             # exact reciprocal

    c_tile = kmn * var_inv                   # (M, TN)  == C tile
    yc_s = y_c * var_inv                     # (1, TN)

    dims = (((1,), (1,)), ((), ()))          # contract the lane/N axis
    a_ref[...] += lax.dot_general(c_tile, kmn, dims,
                                  preferred_element_type=jnp.float32)
    cy_ref[...] += lax.dot_general(yc_s, kmn, dims,
                                   preferred_element_type=jnp.float32)

    # Fused per-lane reduction rows: [y_c^2/var, log var, knn/var].
    red_acc[...] += jnp.concatenate(
        [y_c * yc_s, jnp.log(var), knn * var_inv], axis=0)

    @pl.when(j == j_per_core - 1)
    def _finalize():
        sums = jnp.sum(red_acc[...], axis=-1, keepdims=True)    # (3, 1)
        red_ref[...] = jnp.broadcast_to(sums, red_ref.shape)


def _chol_solve(L, B):
    """Solve (L L^T) X = B with lower-triangular L (batched)."""
    Z = lax.linalg.triangular_solve(L, B, left_side=True, lower=True,
                                    transpose_a=False)
    return lax.linalg.triangular_solve(L, Z, left_side=True, lower=True,
                                       transpose_a=True)


def _chol_info(L):
    # TODO(synk): torch.linalg.cholesky_ex returns the failing leading-minor
    # index; here info is only a 0/1 per-batch success flag.
    d = jnp.diagonal(L, axis1=-2, axis2=-1)
    bad = jnp.any(~jnp.isfinite(d) | (d <= 0.0), axis=-1)
    return bad.astype(jnp.int32)


def _pad_last(x, n_pad, value=0.0):
    pad = n_pad - x.shape[-1]
    if pad <= 0:
        return x
    widths = [(0, 0)] * (x.ndim - 1) + [(0, pad)]
    return jnp.pad(x, widths, constant_values=value)


def _vmem_capacity_bytes():
    try:
        cap = getattr(pltpu.get_tpu_info(), "vmem_capacity_bytes", None)
        if cap:
            return int(cap)
    except Exception:
        pass
    return 64 << 20          # conservative fallback (v7x per-core VMEM)


def _choose_tn(n_data, m, tile_budget_bytes):
    """Largest lane tile (multiple of 128, <= min(n_data, 32768)) that fits
    the double-buffered inputs + scratch + temporaries in `tile_budget_bytes`."""
    bytes_per_lane = 4 * (4 * m + 24)      # 2x kmn, 2x pack, scratch, temps
    cap = (tile_budget_bytes // bytes_per_lane) // 128 * 128
    cap = max(128, min(cap, 32768))
    floor128 = max(128, (n_data // 128) * 128)
    return min(cap, floor128)              # never exceeds n_data (n_data >= 128)


def gp_vfe_varying_noise(K_mm, K_mn, K_nn_diag, y, mean, var):
    B, M, _ = K_mm.shape
    N = K_mn.shape[-1]
    f32 = jnp.float32

    K_mm = K_mm.astype(f32)
    K_mn = K_mn.astype(f32)
    K_mm_j = K_mm + JITTER * jnp.eye(M, dtype=f32)[None]

    y_c = jnp.swapaxes((y - mean).astype(f32), -1, -2)       # (B, 1, N)
    var_t = jnp.swapaxes(var.astype(f32), -1, -2)            # (B, 1, N)
    knn_t = K_nn_diag.astype(f32).reshape(B, 1, N)           # (B, 1, N)

    # Only the N < 128 corner pads (a single 128-lane block); for N >= 128 the
    # ragged tail block is masked in-kernel -> no HBM copy of K_mn.
    n_data = N
    if N < 128:
        n_data = 128
        K_mn = _pad_last(K_mn, 128, 0.0)
        y_c = _pad_last(y_c, 128, 0.0)
        var_t = _pad_last(var_t, 128, 1.0)
        knn_t = _pad_last(knn_t, 128, 0.0)

    # One DMA stream for the three per-point vectors.
    pack = jnp.concatenate([y_c, var_t, knn_t], axis=1)      # (B, 3, n_data)

    # Generation-aware VMEM budget (64 MiB v7x vs 128 MiB v5e/v6e).
    vmem_cap = _vmem_capacity_bytes()
    vmem_limit = max(32 << 20, min(vmem_cap - (4 << 20), int(vmem_cap * 0.85)))
    TN = _choose_tn(n_data, M, int(vmem_limit * 0.7))
    J = pl.cdiv(n_data, TN)

    # Core split of the N axis when B == 1 so v7x's second TensorCore has work
    # (a no-op cost on single-core v5e/v6e: same total steps, one extra tiny sum).
    S = 2 if (B == 1 and J >= 2) else 1
    J0 = pl.cdiv(J, S)
    need_mask = (n_data % TN != 0) or (S * J0 != J)

    kernel = functools.partial(_gp_vfe_kernel, n_valid=n_data, tn=TN,
                               j_per_core=J0, need_mask=need_mask)
    last_blk = J - 1

    def lane_map(b, c, j):
        return (b, 0, jnp.minimum(c * J0 + j, last_blk))

    def out_map(b, c, j):
        return (b, c, 0, 0)

    # TODO(synk): for very small (B, M, N) a multi-batch block (Bb, M, TN) would
    # amortize the ~0.35us/step overhead further; not needed at these sizes.
    # TODO(synk): a bf16 K_mn stream would halve HBM traffic but feeds A ->
    # Cholesky; left in f32 pending numeric validation.
    a_p, cy_p, red_p = pl.pallas_call(
        kernel,
        out_shape=(
            jax.ShapeDtypeStruct((B, S, M, M), f32),
            jax.ShapeDtypeStruct((B, S, 1, M), f32),
            jax.ShapeDtypeStruct((B, S, 3, 128), f32),
        ),
        grid_spec=pltpu.PrefetchScalarGridSpec(
            num_scalar_prefetch=0,
            grid=(B, S, J0),
            in_specs=[
                pl.BlockSpec((None, M, TN), lane_map),     # K_mn
                pl.BlockSpec((None, 3, TN), lane_map),     # [y_c, var, knn]
            ],
            out_specs=[
                pl.BlockSpec((None, None, M, M), out_map),   # C @ K_mn^T
                pl.BlockSpec((None, None, 1, M), out_map),   # (C @ y_c)^T
                pl.BlockSpec((None, None, 3, 128), out_map), # reductions
            ],
            scratch_shapes=[pltpu.VMEM((3, TN), f32)],
        ),
        compiler_params=pltpu.CompilerParams(
            dimension_semantics=("parallel", "parallel", "arbitrary"),
            vmem_limit_bytes=int(vmem_limit)),
    )(K_mn, pack)

    CKt = jnp.sum(a_p, axis=1)                               # (B, M, M)
    C_y = jnp.swapaxes(jnp.sum(cy_p, axis=1), -1, -2)        # (B, M, 1)
    red = jnp.sum(red_p[:, :, :, 0], axis=1)                 # (B, 3)
    s_yy, s_logvar, s_knn = red[:, 0], red[:, 1], red[:, 2]

    A = K_mm_j + CKt

    # TODO(synk): Cholesky / triangular solves have no clean Pallas TPU
    # primitive; these O(M^3) per-batch ops stay in plain JAX (XLA).
    L_mm = jnp.linalg.cholesky(K_mm_j)
    L_A = jnp.linalg.cholesky(A)

    X = _chol_solve(L_A, C_y)                                # A^-1 C_y
    quad = jnp.sum(C_y[..., 0] * X[..., 0], axis=-1)         # (B,)

    # Trace identity: sum(C * K_mm^-1 K_mn) = trace(K_mm^-1 (A - K_mm_j)).
    s_cs = jnp.sum(jnp.diagonal(_chol_solve(L_mm, CKt), axis1=-2, axis2=-1),
                   axis=-1)

    logdet = lambda L: 2.0 * jnp.sum(
        jnp.log(jnp.diagonal(L, axis1=-2, axis2=-1)), axis=-1)

    Nf = float(N)
    data_term = 0.5 * (s_yy / Nf - quad / Nf)
    complexity_term = 0.5 / Nf * (s_logvar + logdet(L_A) - logdet(L_mm))
    constant_term = 0.5 * math.log(2.0 * math.pi)
    trace_term = 0.5 * (s_knn / Nf - s_cs / Nf)

    nll = data_term + complexity_term + constant_term + trace_term
    info = _chol_info(L_mm) + _chol_info(L_A)
    return nll, info


def gp_vfe_reference(K_mm, K_mn, K_nn_diag, y, mean, var):
    """Pure-JAX transcription of the PyTorch forward (for verification)."""
    B, M, _ = K_mm.shape
    N = K_mn.shape[-1]
    var_s = var[..., 0]
    y_c = (y - mean)[..., 0]
    var_inv = 1.0 / var_s
    K_mm_j = K_mm + JITTER * jnp.eye(M, dtype=K_mm.dtype)[None]
    C = K_mn * var_inv[:, None, :]
    A = K_mm_j + C @ jnp.swapaxes(K_mn, -1, -2)
    C_y = C @ y_c[..., None]
    L_mm = jnp.linalg.cholesky(K_mm_j)
    L_A = jnp.linalg.cholesky(A)
    quad = jnp.squeeze(jnp.swapaxes(C_y, -1, -2) @ _chol_solve(L_A, C_y), (-1, -2))
    logdet = lambda L: 2.0 * jnp.sum(
        jnp.log(jnp.diagonal(L, axis1=-2, axis2=-1)), axis=-1)
    data = 0.5 * (jnp.mean(y_c * y_c * var_inv, axis=1) - quad / N)
    comp = 0.5 / N * (jnp.sum(jnp.log(var_s), 1) + logdet(L_A) - logdet(L_mm))
    const = 0.5 * math.log(2 * math.pi)
    trace = 0.5 * (jnp.mean(var_inv * K_nn_diag, 1)
                   - jnp.sum(C / N * _chol_solve(L_mm, K_mn), axis=(1, 2)))
    return data + comp + const + trace


def _make_inputs(key, B, M, N, D):
    kz, kx, ky, km, kv = jax.random.split(key, 5)
    Z = jax.random.normal(kz, (B, M, D), dtype=jnp.float32)      # inducing features
    Xf = jax.random.normal(kx, (B, N, D), dtype=jnp.float32)     # data features
    K_mm = Z @ jnp.swapaxes(Z, -1, -2) + 0.5 * jnp.eye(M, dtype=jnp.float32)[None]
    K_mn = Z @ jnp.swapaxes(Xf, -1, -2)
    K_nn_diag = jnp.sum(Xf * Xf, axis=-1) + 0.5
    y = jax.random.normal(ky, (B, N, 1), dtype=jnp.float32)
    mean = 0.1 * jax.random.normal(km, (B, N, 1), dtype=jnp.float32)
    var = 0.5 + jax.random.uniform(kv, (B, N, 1), dtype=jnp.float32)
    return K_mm, K_mn, K_nn_diag, y, mean, var


if __name__ == "__main__":
    key = jax.random.PRNGKey(0)
    fn = jax.jit(gp_vfe_varying_noise)

    cases = [
        (2, 16, 256, 8),    # lane-aligned N: one block per batch, no masking
        (2, 16, 200, 8),    # ragged tail: in-kernel masking path
        (1, 16, 1000, 8),   # B == 1: N axis split across the 2-way parallel axis
    ]
    for (B, M, N, D) in cases:
        key, sub = jax.random.split(key)
        K_mm, K_mn, K_nn_diag, y, mean, var = _make_inputs(sub, B, M, N, D)
        nll, info = fn(K_mm, K_mn, K_nn_diag, y, mean, var)
        jax.block_until_ready((nll, info))
        nll_ref = gp_vfe_reference(K_mm, K_mn, K_nn_diag, y, mean, var)
        np.testing.assert_allclose(np.asarray(nll), np.asarray(nll_ref),
                                   rtol=1e-3, atol=1e-3)
        assert int(np.asarray(info).sum()) == 0

    print("KERNEL_OK")
</pallas_src>

<mosaic_0001>
module attributes {stable_mosaic.version = 11 : i64} {
  func.func @_gp_vfe_kernel(%arg0: i32, %arg1: i32, %arg2: i32, %arg3: memref<1x16x256xf32, #tpu.memory_space<vmem>>, %arg4: memref<1x3x256xf32, #tpu.memory_space<vmem>>, %arg5: memref<1x1x16x16xf32, #tpu.memory_space<vmem>>, %arg6: memref<1x1x1x16xf32, #tpu.memory_space<vmem>>, %arg7: memref<1x1x3x128xf32, #tpu.memory_space<vmem>>, %arg8: memref<3x256xf32, #tpu.memory_space<vmem>>) attributes {dimension_semantics = [#tpu.dimension_semantics<parallel>, #tpu.dimension_semantics<parallel>, #tpu.dimension_semantics<arbitrary>], iteration_bounds = array<i64: 2, 1, 1>, scalar_prefetch = 0 : i64, scratch_operands = 1 : i64, tpu.core_type = #tpu.core_type<tc>, window_params = [{transform_indices = @transform_0, window_bounds = array<i64: 1, 16, 256>}, {transform_indices = @transform_1, window_bounds = array<i64: 1, 3, 256>}, {transform_indices = @transform_2, window_bounds = array<i64: 1, 1, 16, 16>}, {transform_indices = @transform_3, window_bounds = array<i64: 1, 1, 1, 16>}, {transform_indices = @transform_4, window_bounds = array<i64: 1, 1, 3, 128>}]} {
    %c0_i32 = arith.constant 0 : i32
    %0 = arith.cmpi eq, %arg2, %c0_i32 : i32
    %1 = arith.extui %0 : i1 to i32
    %c0_i32_0 = arith.constant 0 : i32
    %2 = arith.cmpi ne, %1, %c0_i32_0 : i32
    scf.if %2 {
      %cst_33 = arith.constant 0.000000e+00 : f32
      %39 = vector.broadcast %cst_33 : f32 to vector<16x16xf32>
      %c0_34 = arith.constant 0 : index
      %c0_35 = arith.constant 0 : index
      %c0_36 = arith.constant 0 : index
      %c0_37 = arith.constant 0 : index
      %40 = vector.load %arg5[%c0_34, %c0_35, %c0_36, %c0_37] : memref<1x1x16x16xf32, #tpu.memory_space<vmem>>, vector<1x1x16x16xf32>
      %41 = vector.shape_cast %40 : vector<1x1x16x16xf32> to vector<16x16xf32>
      %42 = vector.shape_cast %39 : vector<16x16xf32> to vector<1x1x16x16xf32>
      tpu.vector_store %arg5[%c0_34, %c0_35, %c0_36, %c0_37], %42 {strides = array<i32>} : memref<1x1x16x16xf32, #tpu.memory_space<vmem>>, vector<1x1x16x16xf32>,
      %cst_38 = arith.constant 0.000000e+00 : f32
      %43 = vector.broadcast %cst_38 : f32 to vector<1x16xf32>
      %c0_39 = arith.constant 0 : index
      %c0_40 = arith.constant 0 : index
      %c0_41 = arith.constant 0 : index
      %c0_42 = arith.constant 0 : index
      %44 = vector.load %arg6[%c0_39, %c0_40, %c0_41, %c0_42] : memref<1x1x1x16xf32, #tpu.memory_space<vmem>>, vector<1x1x1x16xf32>
      %45 = vector.shape_cast %44 : vector<1x1x1x16xf32> to vector<1x16xf32>
      %46 = vector.shape_cast %43 : vector<1x16xf32> to vector<1x1x1x16xf32>
      tpu.vector_store %arg6[%c0_39, %c0_40, %c0_41, %c0_42], %46 {strides = array<i32>} : memref<1x1x1x16xf32, #tpu.memory_space<vmem>>, vector<1x1x1x16xf32>,
      %cst_43 = arith.constant 0.000000e+00 : f32
      %47 = vector.broadcast %cst_43 : f32 to vector<3x256xf32>
      %c0_44 = arith.constant 0 : index
      %c0_45 = arith.constant 0 : index
      %48 = vector.load %arg8[%c0_44, %c0_45] : memref<3x256xf32, #tpu.memory_space<vmem>>, vector<3x256xf32>
      tpu.vector_store %arg8[%c0_44, %c0_45], %47 {strides = array<i32>} : memref<3x256xf32, #tpu.memory_space<vmem>>, vector<3x256xf32>,
    } else {
    }
    %c0 = arith.constant 0 : index
    %c0_1 = arith.constant 0 : index
    %c0_2 = arith.constant 0 : index
    %3 = vector.load %arg3[%c0, %c0_1, %c0_2] : memref<1x16x256xf32, #tpu.memory_space<vmem>>, vector<1x16x256xf32>
    %4 = vector.shape_cast %3 : vector<1x16x256xf32> to vector<16x256xf32>
    %c0_3 = arith.constant 0 : index
    %c0_4 = arith.constant 0 : index
    %c0_5 = arith.constant 0 : index
    %5 = vector.load %arg4[%c0_3, %c0_4, %c0_5] : memref<1x3x256xf32, #tpu.memory_space<vmem>>, vector<1x1x256xf32>
    %6 = vector.shape_cast %5 : vector<1x1x256xf32> to vector<1x256xf32>
    %c0_6 = arith.constant 0 : index
    %c1 = arith.constant 1 : index
    %c0_7 = arith.constant 0 : index
    %7 = vector.load %arg4[%c0_6, %c1, %c0_7] : memref<1x3x256xf32, #tpu.memory_space<vmem>>, vector<1x1x256xf32>
    %8 = vector.shape_cast %7 : vector<1x1x256xf32> to vector<1x256xf32>
    %c0_8 = arith.constant 0 : index
    %c2 = arith.constant 2 : index
    %c0_9 = arith.constant 0 : index
    %9 = vector.load %arg4[%c0_8, %c2, %c0_9] : memref<1x3x256xf32, #tpu.memory_space<vmem>>, vector<1x1x256xf32>
    %10 = vector.shape_cast %9 : vector<1x1x256xf32> to vector<1x256xf32>
    %11 = tpu.reciprocal %8 : vector<1x256xf32> -> vector<1x256xf32>
    %12 = vector.broadcast %11 : vector<1x256xf32> to vector<16x256xf32>
    %13 = arith.mulf %4, %12 : vector<16x256xf32>
    %14 = arith.mulf %6, %11 : vector<1x256xf32>
    %c0_10 = arith.constant 0 : index
    %c0_11 = arith.constant 0 : index
    %c0_12 = arith.constant 0 : index
    %c0_13 = arith.constant 0 : index
    %15 = vector.load %arg5[%c0_10, %c0_11, %c0_12, %c0_13] : memref<1x1x16x16xf32, #tpu.memory_space<vmem>>, vector<1x1x16x16xf32>
    %16 = vector.shape_cast %15 : vector<1x1x16x16xf32> to vector<16x16xf32>
    %cst = arith.constant dense<0.000000e+00> : vector<16x16xf32>
    %17 = tpu.matmul %13, %4, %cst {dimension_numbers = #tpu.dot_dimension_numbers<[1], [1], [0], [0], [0, 0, 1, 0], [], []>} : vector<16x256xf32>, vector<16x256xf32>, vector<16x16xf32> -> vector<16x16xf32>
    %18 = arith.addf %16, %17 : vector<16x16xf32>
    %c0_14 = arith.constant 0 : index
    %c0_15 = arith.constant 0 : index
    %c0_16 = arith.constant 0 : index
    %c0_17 = arith.constant 0 : index
    %19 = vector.load %arg5[%c0_14, %c0_15, %c0_16, %c0_17] : memref<1x1x16x16xf32, #tpu.memory_space<vmem>>, vector<1x1x16x16xf32>
    %20 = vector.shape_cast %19 : vector<1x1x16x16xf32> to vector<16x16xf32>
    %21 = vector.shape_cast %18 : vector<16x16xf32> to vector<1x1x16x16xf32>
    tpu.vector_store %arg5[%c0_14, %c0_15, %c0_16, %c0_17], %21 {strides = array<i32>} : memref<1x1x16x16xf32, #tpu.memory_space<vmem>>, vector<1x1x16x16xf32>,
    %c0_18 = arith.constant 0 : index
    %c0_19 = arith.constant 0 : index
    %c0_20 = arith.constant 0 : index
    %c0_21 = arith.constant 0 : index
    %22 = vector.load %arg6[%c0_18, %c0_19, %c0_20, %c0_21] : memref<1x1x1x16xf32, #tpu.memory_space<vmem>>, vector<1x1x1x16xf32>
    %23 = vector.shape_cast %22 : vector<1x1x1x16xf32> to vector<1x16xf32>
    %cst_22 = arith.constant dense<0.000000e+00> : vector<1x16xf32>
    %24 = tpu.matmul %14, %4, %cst_22 {dimension_numbers = #tpu.dot_dimension_numbers<[1], [1], [0], [0], [0, 0, 1, 0], [], []>} : vector<1x256xf32>, vector<16x256xf32>, vector<1x16xf32> -> vector<1x16xf32>
    %25 = arith.addf %23, %24 : vector<1x16xf32>
    %c0_23 = arith.constant 0 : index
    %c0_24 = arith.constant 0 : index
    %c0_25 = arith.constant 0 : index
    %c0_26 = arith.constant 0 : index
    %26 = vector.load %arg6[%c0_23, %c0_24, %c0_25, %c0_26] : memref<1x1x1x16xf32, #tpu.memory_space<vmem>>, vector<1x1x1x16xf32>
    %27 = vector.shape_cast %26 : vector<1x1x1x16xf32> to vector<1x16xf32>
    %28 = vector.shape_cast %25 : vector<1x16xf32> to vector<1x1x1x16xf32>
    tpu.vector_store %arg6[%c0_23, %c0_24, %c0_25, %c0_26], %28 {strides = array<i32>} : memref<1x1x1x16xf32, #tpu.memory_space<vmem>>, vector<1x1x1x16xf32>,
    %c0_27 = arith.constant 0 : index
    %c0_28 = arith.constant 0 : index
    %29 = vector.load %arg8[%c0_27, %c0_28] : memref<3x256xf32, #tpu.memory_space<vmem>>, vector<3x256xf32>
    %30 = arith.mulf %6, %14 : vector<1x256xf32>
    %31 = math.log %8 : vector<1x256xf32>
    %32 = arith.mulf %10, %11 : vector<1x256xf32>
    %33 = tpu.concatenate %30, %31, %32 in 0 : vector<1x256xf32>, vector<1x256xf32>, vector<1x256xf32> -> vector<3x256xf32>
    %34 = arith.addf %29, %33 : vector<3x256xf32>
    %c0_29 = arith.constant 0 : index
    %c0_30 = arith.constant 0 : index
    %35 = vector.load %arg8[%c0_29, %c0_30] : memref<3x256xf32, #tpu.memory_space<vmem>>, vector<3x256xf32>
    tpu.vector_store %arg8[%c0_29, %c0_30], %34 {strides = array<i32>} : memref<3x256xf32, #tpu.memory_space<vmem>>, vector<3x256xf32>,
    %c0_i32_31 = arith.constant 0 : i32
    %36 = arith.cmpi eq, %arg2, %c0_i32_31 : i32
    %37 = arith.extui %36 : i1 to i32
    %c0_i32_32 = arith.constant 0 : i32
    %38 = arith.cmpi ne, %37, %c0_i32_32 : i32
    scf.if %38 {
      %c0_33 = arith.constant 0 : index
      %c0_34 = arith.constant 0 : index
      %39 = vector.load %arg8[%c0_33, %c0_34] : memref<3x256xf32, #tpu.memory_space<vmem>>, vector<3x256xf32>
      %cst_35 = arith.constant dense<0.000000e+00> : vector<3xf32>
      %40 = vector.multi_reduction <add>, %39, %cst_35 [1] : vector<3x256xf32> to vector<3xf32>
      %41 = vector.shape_cast %40 : vector<3xf32> to vector<3x1xf32>
      %42 = vector.shape_cast %41 : vector<3x1xf32> to vector<3x1xf32>
      %43 = vector.broadcast %42 : vector<3x1xf32> to vector<3x128xf32>
      %c0_36 = arith.constant 0 : index
      %c0_37 = arith.constant 0 : index
      %c0_38 = arith.constant 0 : index
      %c0_39 = arith.constant 0 : index
      %44 = vector.load %arg7[%c0_36, %c0_37, %c0_38, %c0_39] : memref<1x1x3x128xf32, #tpu.memory_space<vmem>>, vector<1x1x3x128xf32>
      %45 = vector.shape_cast %44 : vector<1x1x3x128xf32> to vector<3x128xf32>
      %46 = vector.shape_cast %43 : vector<3x128xf32> to vector<1x1x3x128xf32>
      tpu.vector_store %arg7[%c0_36, %c0_37, %c0_38, %c0_39], %46 {strides = array<i32>} : memref<1x1x3x128xf32, #tpu.memory_space<vmem>>, vector<1x1x3x128xf32>,
    } else {
    }
    return
  }
  func.func @transform_0(%arg0: i32, %arg1: i32, %arg2: i32) -> (i32, i32, i32) {
    %c1_i32 = arith.constant 1 : i32
    %0 = arith.muli %arg1, %c1_i32 : i32
    %1 = arith.addi %0, %arg2 : i32
    %c0_i32 = arith.constant 0 : i32
    %2 = arith.minsi %1, %c0_i32 : i32
    %c0_i32_0 = arith.constant 0 : i32
    %c0_i32_1 = arith.constant 0 : i32
    return %arg0, %c0_i32_0, %2 : i32, i32, i32
  }
  func.func @transform_1(%arg0: i32, %arg1: i32, %arg2: i32) -> (i32, i32, i32) {
    %c1_i32 = arith.constant 1 : i32
    %0 = arith.muli %arg1, %c1_i32 : i32
    %1 = arith.addi %0, %arg2 : i32
    %c0_i32 = arith.constant 0 : i32
    %2 = arith.minsi %1, %c0_i32 : i32
    %c0_i32_0 = arith.constant 0 : i32
    %c0_i32_1 = arith.constant 0 : i32
    return %arg0, %c0_i32_0, %2 : i32, i32, i32
  }
  func.func @transform_2(%arg0: i32, %arg1: i32, %arg2: i32) -> (i32, i32, i32, i32) {
    %c0_i32 = arith.constant 0 : i32
    %c0_i32_0 = arith.constant 0 : i32
    %c0_i32_1 = arith.constant 0 : i32
    return %arg0, %arg1, %c0_i32, %c0_i32_0 : i32, i32, i32, i32
  }
  func.func @transform_3(%arg0: i32, %arg1: i32, %arg2: i32) -> (i32, i32, i32, i32) {
    %c0_i32 = arith.constant 0 : i32
    %c0_i32_0 = arith.constant 0 : i32
    %c0_i32_1 = arith.constant 0 : i32
    return %arg0, %arg1, %c0_i32, %c0_i32_0 : i32, i32, i32, i32
  }
  func.func @transform_4(%arg0: i32, %arg1: i32, %arg2: i32) -> (i32, i32, i32, i32) {
    %c0_i32 = arith.constant 0 : i32
    %c0_i32_0 = arith.constant 0 : i32
    %c0_i32_1 = arith.constant 0 : i32
    return %arg0, %arg1, %c0_i32, %c0_i32_0 : i32, i32, i32, i32
  }
}

</mosaic_0001>

<bundles_post_ra>
// kernel: custom-call.17
= control target key start
LH: loop header
LB: loop body
LE: loop exit
PB: predicated region body
PF: predicated region fallthrough
CT: control target
= control target key end

     0   :  { %s1016_s6 = smov 0   ;;  %s1018_s7 = smov 0   ;;  %s1179_s0 = inlined_call_operand.vmem [shape: f32[2,16,16], index: 0, kind: input, shape index: {}]   ;;  %s1180_s1 = inlined_call_operand.vmem [shape: f32[2,16,16], index: 1, kind: output, shape index: {}]  }
   0x1   :  { %s1020_s8 = smov 0  }
   0x2 LB: > { %s829_s9 = sadd.s32 4294967295, %s1003_s8   ;;  %s26_s10 = sadd.s32 1, %s999_s7  ;;  %s1003_s8 = sphi %s1020_s8, %s7_s8   ;;  %s999_s7 = sphi %s1018_s7, %s1182_s7   ;;  %s995_s6 = sphi %s1016_s6, %s1181_s6  }
   0x3   : > { %p28_p0 = scmp.ge.s32.totalorder %s26_s10, 2  ;;  %p831_p1 = scmp.ge.s32.totalorder %s1003_s8, 2 }
   0x4   : > { %s42_s11 = sand.u32 (!%p831_p1), 1, %s1003_s8   ;;  %s922_s12 = sshll.u32 (!%p831_p1), %s999_s7, 4 }
   0x5   : > { %s1184_s10 = smov (%p28_p0, %s26_s10), 0  ;;  %40 = sbr.rel (%p831_p1) target bundleno = 13 (0xd), region = 16 }
   0x6   : > { %s832_s13 = sshll.u32 (!%p831_p1), %s42_s11, 4  ;;  %s49_s16 = scalar_lea.vmem (!%p831_p1), %s1179_s0, %s922_s12 }
   0x7   : > { %s44_s17 = scalar_lea.vmem (!%p831_p1), [#allocation0], %s832_s13 }
   0xa   : > { %v80_v0 = vld [vmem:[%s49_s16] sm:$0xff]  ;;  %v82_v1 = vld [vmem:[%s49_s16 + $0x8] sm:$0xff] }
   0xb   : > { %81 = vst [vmem:[%s44_s17] sm:$0xff] %v80_v0 }
   0xc   : > { %83 = vst [vmem:[%s44_s17 + $0x8] sm:$0xff] %v82_v1 }
   0xd PF: > { %p835_p2 = scmp.ge.s32.totalorder %s1003_s8, 1  ;;  %p88_p3 = scmp.lt.s32.totalorder %s1003_s8, 3 }
   0xf   : > { %p89_p4 = pnand %p835_p2, %p88_p3 }
  0x10   : > { %s95_s18 = sand.u32 (!%p89_p4), 1, %s829_s9   ;;  %s923_s22 = sshll.u32 (!%p89_p4), %s995_s6, 4 }
  0x11   : > { %92 = sbr.rel (%p89_p4) target bundleno = 2441 (0x989), region = 54  ;;  %s836_s19 = sshll.u32 (!%p89_p4), %s95_s18, 4 }
  0x12   : > { %s1043_s20 = scalar_lea.vmem (!%p89_p4), [#allocation1], %s836_s19  ;;  %s1047_s21 = scalar_lea.vmem (!%p89_p4), [#allocation0], %s836_s19 }
  0x13   : > { %s1156_s25 = scalar_lea.vmem (!%p89_p4), %s1180_s1, %s923_s22 }
  0x16   : > { %v1005_v2 = vmov 0.0   ;;  %v111_v6 = vld [vmem:[%s1047_s21] ss:$0 sm:$0xff]  ;;  %vm109_vm3 = vcmask 7168   ;;  %v1057_v23 = vld [vmem:[%s1047_s21 + $0x8] sm:$0xff]  ;;  %vm149_vm5 = vcmask 15368  }
  0x17   : > { %106 = vst [vmem:[%s1043_s20] sm:$0xff] %v1005_v2  ;;  %v1051_v14 = vld [vmem:[%s1047_s21] sm:$0xff]  ;;  %vm175_vm6 = vcmask 1047553   ;;  %vm193_vm11 = vcmask 23568   ;;  %vm219_vm12 = vcmask 1047554  }
  0x18   : > { %v843_v30 = vld [vmem:[%s1047_s21 + $0x1] ss:$0 sm:$0xff]  ;;  %vm176_vm9 = vmand %vm149_vm5, %vm175_vm6  ;;  %v848_v54 = vld [vmem:[%s1047_s21 + $0x2] ss:$0 sm:$0xff] }
  0x19   : > { %vm220_vm15 = vmand %vm193_vm11, %vm219_vm12 }
  0x1e   : > { %v110_v3 = vld [vmem:[%s1043_s20] ss:$0 sm:$0xff] }
  0x1f   : > { %v112_v4 = vmul.f32 %v110_v3, %v110_v3  ;;  %v140_v5 = vmul.f32 0.0, %v110_v3 }
  0x21   : > { %113 = vadd.xlane.f32.xlu0 %v112_v4  ;;  %141 = vadd.xlane.f32.xlu2 %v140_v5 }
  0x29   : > { %129 = vadd.xlane.f32.xlu0 %v140_v5 }
  0x94   : > { %v114_v7 = vpop.xlane.xlu0 %113  ;;  %v142_v22 = vpop.xlane.xlu2 %141 }
  0x95   : > { %v115_v8 = vsub.f32 %v111_v6, %v114_v7  ;;  %v143_v25 = vsub.f32 %v1057_v23, %v142_v22 }
  0x97   : > { %949 = vrsqrt.f32 %v115_v8  ;;  %vm122_vm1 = vweird.f32 %v115_v8 }
  0x9c   : > { %v130_v13 = vpop.xlane.xlu0 %129 }
  0x9d   : > { %v950_v9 = vpop.eup %949  ;;  %v131_v16 = vsub.f32 %v1051_v14, %v130_v13 }
  0x9e   : > { %v117_v10 = vmul.f32 %v950_v9, %v115_v8  ;;  %vm123_vm0 = vweird.f32 %v950_v9 }
  0x9f   : > { %vm124_vm2 = vmor %vm122_vm1, %vm123_vm0  ;;  %vm237_vm1 = vcmask 31768  }
  0xa0   : > { %v118_v11 = vmul.f32 %v950_v9, %v117_v10 }
  0xa2   : > { %v119_v12 = vmul.f32 0.5, %v118_v11 }
  0xa4   : > { %v120_v15 = vsub.f32 1.5, %v119_v12 }
  0xa6   : > { %v121_v17 = vmul.f32 %v950_v9, %v120_v15  ;;  %v853_v15 = vld [vmem:[%s1047_s21 + $0x3] ss:$0 sm:$0xff] }
  0xa8   : > { %v125_v18 = vsel %vm124_vm2, %v950_v9, %v121_v17  ;;  %vm263_vm2 = vcmask 1047555  }
  0xa9   : > { %v132_v19 = vmul.f32 %v131_v16, %v125_v18  ;;  %v144_v26 = vmul.f32 %v143_v25, %v125_v18 }
  0xab   : > { %v133_v20 = vsel %vm109_vm3, %v132_v19, 0.0  ;;  %v145_v28 = vsel %vm109_vm3, %v144_v26, 0.0 }
  0xac   : > { %135 = vst [vmem:[%s1043_s20] sm:$0xff] %v133_v20 }
  0xb3   : > { %v842_v21 = vld [vmem:[%s1043_s20 + $0x1] ss:$0 sm:$0xff] }
  0xb4   : > { %v154_v24 = vmul.f32 %v842_v21, %v842_v21  ;;  %v170_v27 = vmul.f32 %v842_v21, %v133_v20  ;;  %v184_v29 = vmul.f32 %v842_v21, %v145_v28 }
  0xb6   : > { %155 = vadd.xlane.f32.xlu1 %v154_v24 }
  0xbe   : > { %171 = vadd.xlane.f32.xlu1 %v170_v27 }
  0xc6   : > { %185 = vadd.xlane.f32.xlu1 %v184_v29 }
 0x129   : > { %v156_v31 = vpop.xlane.xlu1 %155 }
 0x12a   : > { %v157_v32 = vsub.f32 %v843_v30, %v156_v31 }
 0x12c   : > { %951 = vrsqrt.f32 %v157_v32  ;;  %vm164_vm7 = vweird.f32 %v157_v32 }
 0x131   : > { %v172_v35 = vpop.xlane.xlu1 %171 }
 0x132   : > { %v952_v33 = vpop.eup %951  ;;  %v173_v40 = vsub.f32 %v1051_v14, %v172_v35 }
 0x133   : > { %v159_v34 = vmul.f32 %v952_v33, %v157_v32  ;;  %vm165_vm4 = vweird.f32 %v952_v33 }
 0x134   : > { %vm166_vm8 = vmor %vm164_vm7, %vm165_vm4 }
 0x135   : > { %v160_v36 = vmul.f32 %v952_v33, %v159_v34 }
 0x137   : > { %v161_v37 = vmul.f32 0.5, %v160_v36 }
 0x139   : > { %v162_v38 = vsub.f32 1.5, %v161_v37  ;;  %v186_v42 = vpop.xlane.xlu1 %185 }
 0x13a   : > { %v187_v45 = vsub.f32 %v1057_v23, %v186_v42 }
 0x13b   : > { %v163_v39 = vmul.f32 %v952_v33, %v162_v38 }
 0x13d   : > { %v167_v41 = vsel %vm166_vm8, %v952_v33, %v163_v39  ;;  %vm281_vm8 = vcmask 39968  }
 0x13e   : > { %v174_v43 = vmul.f32 %v173_v40, %v167_v41  ;;  %v188_v47 = vmul.f32 %v187_v45, %v167_v41  ;;  %v858_v40 = vld [vmem:[%s1047_s21 + $0x4] ss:$0 sm:$0xff] }
 0x140   : > { %v177_v44 = vsel %vm176_vm9, %v174_v43, 0.0  ;;  %v189_v48 = vsel %vm149_vm5, %v188_v47, 0.0  ;;  %vm264_vm5 = vmand %vm237_vm1, %vm263_vm2  ;;  %vm307_vm9 = vcmask 1047556  }
 0x141   : > { %v178_v46 = vadd.f32 %v177_v44, %v133_v20  ;;  %v190_v49 = vadd.f32 %v189_v48, %v145_v28 }
 0x143   : > { %179 = vst [vmem:[%s1043_s20] sm:$0xff] %v178_v46 }
 0x14a   : > { %v847_v50 = vld [vmem:[%s1043_s20 + $0x2] ss:$0 sm:$0xff] }
 0x14b   : > { %v214_v51 = vmul.f32 %v847_v50, %v178_v46  ;;  %v198_v52 = vmul.f32 %v847_v50, %v847_v50  ;;  %v228_v53 = vmul.f32 %v847_v50, %v190_v49 }
 0x14d   : > { %215 = vadd.xlane.f32.xlu0 %v214_v51  ;;  %199 = vadd.xlane.f32.xlu2 %v198_v52 }
 0x14e   : > { %229 = vadd.xlane.f32.xlu1 %v228_v53 }
 0x1c0   : > { %v200_v55 = vpop.xlane.xlu2 %199  ;;  %v216_v61 = vpop.xlane.xlu0 %215 }
 0x1c1   : > { %v201_v56 = vsub.f32 %v848_v54, %v200_v55  ;;  %v217_v0 = vsub.f32 %v1051_v14, %v216_v61  ;;  %v230_v5 = vpop.xlane.xlu1 %229 }
 0x1c2   : > { %v231_v6 = vsub.f32 %v1057_v23, %v230_v5 }
 0x1c3   : > { %953 = vrsqrt.f32 %v201_v56  ;;  %vm208_vm13 = vweird.f32 %v201_v56 }
 0x1c9   : > { %v954_v57 = vpop.eup %953 }
 0x1ca   : > { %v203_v58 = vmul.f32 %v954_v57, %v201_v56  ;;  %vm209_vm10 = vweird.f32 %v954_v57 }
 0x1cb   : > { %vm210_vm14 = vmor %vm208_vm13, %vm209_vm10 }
 0x1cc   : > { %v204_v59 = vmul.f32 %v954_v57, %v203_v58  ;;  %vm308_vm13 = vmand %vm281_vm8, %vm307_vm9 }
 0x1ce   : > { %v205_v60 = vmul.f32 0.5, %v204_v59 }
 0x1d0   : > { %v206_v62 = vsub.f32 1.5, %v205_v60 }
 0x1d2   : > { %v207_v63 = vmul.f32 %v954_v57, %v206_v62 }
 0x1d4   : > { %v211_v1 = vsel %vm210_vm14, %v954_v57, %v207_v63 }
 0x1d5   : > { %v218_v2 = vmul.f32 %v217_v0, %v211_v1  ;;  %v232_v7 = vmul.f32 %v231_v6, %v211_v1  ;;  %v863_v0 = vld [vmem:[%s1047_s21 + $0x5] ss:$0 sm:$0xff] }
 0x1d7   : > { %v221_v3 = vsel %vm220_vm15, %v218_v2, 0.0  ;;  %v233_v11 = vsel %vm193_vm11, %v232_v7, 0.0  ;;  %vm325_vm15 = vcmask 48168  }
 0x1d8   : > { %v222_v4 = vadd.f32 %v221_v3, %v178_v46  ;;  %v234_v12 = vadd.f32 %v233_v11, %v190_v49 }
 0x1da   : > { %223 = vst [vmem:[%s1043_s20] sm:$0xff] %v222_v4 }
 0x1e1   : > { %v852_v8 = vld [vmem:[%s1043_s20 + $0x3] ss:$0 sm:$0xff] }
 0x1e2   : > { %v258_v9 = vmul.f32 %v852_v8, %v222_v4  ;;  %v242_v10 = vmul.f32 %v852_v8, %v852_v8  ;;  %v272_v13 = vmul.f32 %v852_v8, %v234_v12 }
 0x1e4   : > { %259 = vadd.xlane.f32.xlu0 %v258_v9  ;;  %243 = vadd.xlane.f32.xlu2 %v242_v10 }
 0x1ec   : > { %273 = vadd.xlane.f32.xlu0 %v272_v13 }
 0x257   : > { %v244_v16 = vpop.xlane.xlu2 %243  ;;  %v260_v22 = vpop.xlane.xlu0 %259 }
 0x258   : > { %v245_v17 = vsub.f32 %v853_v15, %v244_v16  ;;  %v261_v26 = vsub.f32 %v1051_v14, %v260_v22 }
 0x25a   : > { %955 = vrsqrt.f32 %v245_v17  ;;  %vm252_vm3 = vweird.f32 %v245_v17 }
 0x25f   : > { %v274_v31 = vpop.xlane.xlu0 %273 }
 0x260   : > { %v956_v18 = vpop.eup %955  ;;  %v275_v32 = vsub.f32 %v1057_v23, %v274_v31 }
 0x261   : > { %v247_v19 = vmul.f32 %v956_v18, %v245_v17  ;;  %vm253_vm0 = vweird.f32 %v956_v18 }
 0x262   : > { %vm254_vm4 = vmor %vm252_vm3, %vm253_vm0  ;;  %vm351_vm0 = vcmask 1047557  }
 0x263   : > { %v248_v20 = vmul.f32 %v956_v18, %v247_v19 }
 0x265   : > { %v249_v21 = vmul.f32 0.5, %v248_v20 }
 0x267   : > { %v250_v24 = vsub.f32 1.5, %v249_v21 }
 0x269   : > { %v251_v25 = vmul.f32 %v956_v18, %v250_v24 }
 0x26b   : > { %v255_v27 = vsel %vm254_vm4, %v956_v18, %v251_v25  ;;  %vm352_vm4 = vmand %vm325_vm15, %vm351_vm0 }
 0x26c   : > { %v262_v28 = vmul.f32 %v261_v26, %v255_v27  ;;  %v276_v33 = vmul.f32 %v275_v32, %v255_v27  ;;  %v868_v26 = vld [vmem:[%s1047_s21 + $0x6] ss:$0 sm:$0xff] }
 0x26e   : > { %v265_v29 = vsel %vm264_vm5, %v262_v28, 0.0  ;;  %v277_v37 = vsel %vm237_vm1, %v276_v33, 0.0 }
 0x26f   : > { %v266_v30 = vadd.f32 %v265_v29, %v222_v4  ;;  %v278_v38 = vadd.f32 %v277_v37, %v234_v12 }
 0x271   : > { %267 = vst [vmem:[%s1043_s20] sm:$0xff] %v266_v30 }
 0x278   : > { %v857_v34 = vld [vmem:[%s1043_s20 + $0x4] ss:$0 sm:$0xff] }
 0x279   : > { %v286_v35 = vmul.f32 %v857_v34, %v857_v34  ;;  %v302_v36 = vmul.f32 %v857_v34, %v266_v30  ;;  %v316_v39 = vmul.f32 %v857_v34, %v278_v38 }
 0x27b   : > { %287 = vadd.xlane.f32.xlu2 %v286_v35  ;;  %303 = vadd.xlane.f32.xlu1 %v302_v36 }
 0x283   : > { %317 = vadd.xlane.f32.xlu2 %v316_v39 }
 0x2ee   : > { %v288_v41 = vpop.xlane.xlu2 %287  ;;  %v304_v48 = vpop.xlane.xlu1 %303 }
 0x2ef   : > { %v289_v42 = vsub.f32 %v858_v40, %v288_v41  ;;  %v305_v50 = vsub.f32 %v1051_v14, %v304_v48 }
 0x2f1   : > { %957 = vrsqrt.f32 %v289_v42  ;;  %vm296_vm10 = vweird.f32 %v289_v42 }
 0x2f6   : > { %v318_v52 = vpop.xlane.xlu2 %317 }
 0x2f7   : > { %v958_v43 = vpop.eup %957  ;;  %v319_v55 = vsub.f32 %v1057_v23, %v318_v52 }
 0x2f8   : > { %v291_v44 = vmul.f32 %v958_v43, %v289_v42  ;;  %vm297_vm7 = vweird.f32 %v958_v43 }
 0x2f9   : > { %vm298_vm11 = vmor %vm296_vm10, %vm297_vm7  ;;  %vm369_vm7 = vcmask 56368  }
 0x2fa   : > { %v292_v45 = vmul.f32 %v958_v43, %v291_v44 }
 0x2fc   : > { %v293_v46 = vmul.f32 0.5, %v292_v45 }
 0x2fe   : > { %v294_v47 = vsub.f32 1.5, %v293_v46 }
 0x300   : > { %v295_v49 = vmul.f32 %v958_v43, %v294_v47 }
 0x302   : > { %v299_v51 = vsel %vm298_vm11, %v958_v43, %v295_v49  ;;  %v873_v49 = vld [vmem:[%s1047_s21 + $0x7] ss:$0 sm:$0xff] }
 0x303   : > { %v306_v53 = vmul.f32 %v305_v50, %v299_v51  ;;  %v320_v57 = vmul.f32 %v319_v55, %v299_v51 }
 0x305   : > { %v309_v54 = vsel %vm308_vm13, %v306_v53, 0.0  ;;  %v321_v58 = vsel %vm281_vm8, %v320_v57, 0.0  ;;  %vm395_vm8 = vcmask 1047558  }
 0x306   : > { %v310_v56 = vadd.f32 %v309_v54, %v266_v30  ;;  %v322_v59 = vadd.f32 %v321_v58, %v278_v38  ;;  %vm396_vm13 = vmand %vm369_vm7, %vm395_vm8 }
 0x308   : > { %311 = vst [vmem:[%s1043_s20] sm:$0xff] %v310_v56 }
 0x30f   : > { %v862_v60 = vld [vmem:[%s1043_s20 + $0x5] ss:$0 sm:$0xff] }
 0x310   : > { %v360_v61 = vmul.f32 %v862_v60, %v322_v59  ;;  %v346_v62 = vmul.f32 %v862_v60, %v310_v56  ;;  %v330_v63 = vmul.f32 %v862_v60, %v862_v60 }
 0x312   : > { %361 = vadd.xlane.f32.xlu2 %v360_v61  ;;  %347 = vadd.xlane.f32.xlu1 %v346_v62 }
 0x313   : > { %331 = vadd.xlane.f32.xlu0 %v330_v63 }
 0x385   : > { %v348_v7 = vpop.xlane.xlu1 %347  ;;  %v362_v11 = vpop.xlane.xlu2 %361 }
 0x386   : > { %v332_v1 = vpop.xlane.xlu0 %331  ;;  %v349_v10 = vsub.f32 %v1051_v14, %v348_v7  ;;  %v363_v15 = vsub.f32 %v1057_v23, %v362_v11 }
 0x387   : > { %v333_v2 = vsub.f32 %v863_v0, %v332_v1 }
 0x389   : > { %959 = vrsqrt.f32 %v333_v2  ;;  %vm340_vm1 = vweird.f32 %v333_v2 }
 0x38f   : > { %v960_v3 = vpop.eup %959 }
 0x390   : > { %v335_v4 = vmul.f32 %v960_v3, %v333_v2  ;;  %vm341_vm14 = vweird.f32 %v960_v3 }
 0x391   : > { %vm342_vm3 = vmor %vm340_vm1, %vm341_vm14 }
 0x392   : > { %v336_v5 = vmul.f32 %v960_v3, %v335_v4 }
 0x394   : > { %v337_v6 = vmul.f32 0.5, %v336_v5 }
 0x396   : > { %v338_v8 = vsub.f32 1.5, %v337_v6 }
 0x398   : > { %v339_v9 = vmul.f32 %v960_v3, %v338_v8 }
 0x39a   : > { %v343_v12 = vsel %vm342_vm3, %v960_v3, %v339_v9  ;;  %vm413_vm3 = vcmask 64568   ;;  %v878_v3 = vld [vmem:[%s1047_s21 + $0x8] ss:$0 sm:$0xff] }
 0x39b   : > { %v350_v13 = vmul.f32 %v349_v10, %v343_v12  ;;  %v364_v18 = vmul.f32 %v363_v15, %v343_v12 }
 0x39d   : > { %v353_v16 = vsel %vm352_vm4, %v350_v13, 0.0  ;;  %v365_v19 = vsel %vm325_vm15, %v364_v18, 0.0 }
 0x39e   : > { %v354_v17 = vadd.f32 %v353_v16, %v310_v56  ;;  %v366_v20 = vadd.f32 %v365_v19, %v322_v59 }
 0x3a0   : > { %355 = vst [vmem:[%s1043_s20] sm:$0xff] %v354_v17 }
 0x3a7   : > { %v867_v21 = vld [vmem:[%s1043_s20 + $0x6] ss:$0 sm:$0xff] }
 0x3a8   : > { %v404_v22 = vmul.f32 %v867_v21, %v366_v20  ;;  %v390_v24 = vmul.f32 %v867_v21, %v354_v17  ;;  %v374_v25 = vmul.f32 %v867_v21, %v867_v21 }
 0x3aa   : > { %405 = vadd.xlane.f32.xlu2 %v404_v22  ;;  %391 = vadd.xlane.f32.xlu1 %v390_v24  ;;  %v883_v22 = vld [vmem:[%s1047_s21 + $0x9] ss:$0 sm:$0xff] }
 0x3ab   : > { %375 = vadd.xlane.f32.xlu0 %v374_v25 }
 0x41d   : > { %v392_v33 = vpop.xlane.xlu1 %391  ;;  %v406_v37 = vpop.xlane.xlu2 %405 }
 0x41e   : > { %v376_v27 = vpop.xlane.xlu0 %375  ;;  %v393_v36 = vsub.f32 %v1051_v14, %v392_v33  ;;  %v407_v40 = vsub.f32 %v1057_v23, %v406_v37 }
 0x41f   : > { %v377_v28 = vsub.f32 %v868_v26, %v376_v27 }
 0x421   : > { %961 = vrsqrt.f32 %v377_v28  ;;  %vm384_vm10 = vweird.f32 %v377_v28 }
 0x427   : > { %v962_v29 = vpop.eup %961 }
 0x428   : > { %v379_v30 = vmul.f32 %v962_v29, %v377_v28  ;;  %vm385_vm5 = vweird.f32 %v962_v29 }
 0x429   : > { %vm386_vm11 = vmor %vm384_vm10, %vm385_vm5  ;;  %vm457_vm10 = vcmask 72768  }
 0x42a   : > { %v380_v31 = vmul.f32 %v962_v29, %v379_v30 }
 0x42c   : > { %v381_v32 = vmul.f32 0.5, %v380_v31 }
 0x42e   : > { %v382_v34 = vsub.f32 1.5, %v381_v32 }
 0x430   : > { %v383_v35 = vmul.f32 %v962_v29, %v382_v34 }
 0x432   : > { %v387_v38 = vsel %vm386_vm11, %v962_v29, %v383_v35 }
 0x433   : > { %v394_v39 = vmul.f32 %v393_v36, %v387_v38  ;;  %v408_v43 = vmul.f32 %v407_v40, %v387_v38 }
 0x435   : > { %v397_v41 = vsel %vm396_vm13, %v394_v39, 0.0  ;;  %v409_v44 = vsel %vm369_vm7, %v408_v43, 0.0  ;;  %vm489_vm13 = vcmask 80968  }
 0x436   : > { %v1098_v42 = vadd.f32 %v397_v41, %v354_v17  ;;  %v410_v45 = vadd.f32 %v409_v44, %v366_v20  ;;  %v888_v41 = vld [vmem:[%s1047_s21 + $0xa] ss:$0 sm:$0xff] }
 0x438   : > { %399 = vst [vmem:[%s1043_s20] sm:$0xff] %v1098_v42 }
 0x43f   : > { %v1103_v46 = vld [vmem:[%s1043_s20 + $0x7] ss:$0 sm:$0xff] }
 0x440   : > { %v448_v47 = vmul.f32 %v1103_v46, %v410_v45  ;;  %v418_v48 = vmul.f32 %v1103_v46, %v1103_v46 }
 0x442   : > { %449 = vadd.xlane.f32.xlu1 %v448_v47  ;;  %419 = vadd.xlane.f32.xlu0 %v418_v48 }
 0x4b5   : > { %v420_v50 = vpop.xlane.xlu0 %419  ;;  %v450_v56 = vpop.xlane.xlu1 %449 }
 0x4b6   : > { %v421_v51 = vsub.f32 %v873_v49, %v420_v50  ;;  %v451_v59 = vsub.f32 %v1057_v23, %v450_v56 }
 0x4b8   : > { %963 = vrsqrt.f32 %v421_v51  ;;  %vm428_vm15 = vweird.f32 %v421_v51 }
 0x4be   : > { %v964_v52 = vpop.eup %963 }
 0x4bf   : > { %v423_v53 = vmul.f32 %v964_v52, %v421_v51  ;;  %vm429_vm14 = vweird.f32 %v964_v52 }
 0x4c0   : > { %vm430_vm1 = vmor %vm428_vm15, %vm429_vm14 }
 0x4c1   : > { %v424_v54 = vmul.f32 %v964_v52, %v423_v53 }
 0x4c3   : > { %v425_v55 = vmul.f32 0.5, %v424_v54 }
 0x4c5   : > { %v426_v57 = vsub.f32 1.5, %v425_v55 }
 0x4c7   : > { %v427_v58 = vmul.f32 %v964_v52, %v426_v57 }
 0x4c9   : > { %v1110_v60 = vsel %vm430_vm1, %v964_v52, %v427_v58  ;;  %vm518_vm1 = vmand %vm489_vm13, %vm175_vm6 }
 0x4ca   : > { %v452_v61 = vmul.f32 %v451_v59, %v1110_v60 }
 0x4cc   : > { %v453_v62 = vsel %vm413_vm3, %v452_v61, 0.0 }
 0x4cd   : > { %v454_v63 = vadd.f32 %v453_v62, %v410_v45  ;;  %v893_v62 = vld [vmem:[%s1047_s21 + $0xb] ss:$0 sm:$0xff] }
 0x4cf   : > { %876 = vst [vmem:[%s1043_s20 + $0x8] sm:$0xff] %v454_v63 }
 0x4d6   : > { %v877_v0 = vld [vmem:[%s1043_s20 + $0x8] ss:$0 sm:$0xff] }
 0x4d7   : > { %v480_v1 = vmul.f32 %v877_v0, %v454_v63  ;;  %v462_v2 = vmul.f32 %v877_v0, %v877_v0 }
 0x4d9   : > { %481 = vadd.xlane.f32.xlu0 %v480_v1  ;;  %463 = vadd.xlane.f32.xlu2 %v462_v2 }
 0x54c   : > { %v464_v4 = vpop.xlane.xlu2 %463  ;;  %v482_v10 = vpop.xlane.xlu0 %481 }
 0x54d   : > { %v465_v5 = vsub.f32 %v878_v3, %v464_v4  ;;  %v483_v13 = vsub.f32 %v1057_v23, %v482_v10 }
 0x54f   : > { %965 = vrsqrt.f32 %v465_v5  ;;  %vm472_vm5 = vweird.f32 %v465_v5 }
 0x555   : > { %v966_v6 = vpop.eup %965 }
 0x556   : > { %v467_v7 = vmul.f32 %v966_v6, %v465_v5  ;;  %vm473_vm4 = vweird.f32 %v966_v6 }
 0x557   : > { %vm474_vm7 = vmor %vm472_vm5, %vm473_vm4  ;;  %vm523_vm4 = vcmask 89168  }
 0x558   : > { %v468_v8 = vmul.f32 %v966_v6, %v467_v7 }
 0x55a   : > { %v469_v9 = vmul.f32 0.5, %v468_v8 }
 0x55c   : > { %v470_v11 = vsub.f32 1.5, %v469_v9 }
 0x55e   : > { %v471_v12 = vmul.f32 %v966_v6, %v470_v11 }
 0x560   : > { %v475_v15 = vsel %vm474_vm7, %v966_v6, %v471_v12 }
 0x561   : > { %v484_v16 = vmul.f32 %v483_v13, %v475_v15 }
 0x563   : > { %v485_v17 = vsel %vm457_vm10, %v484_v16, 0.0  ;;  %vm552_vm10 = vmand %vm523_vm4, %vm219_vm12 }
 0x564   : > { %v486_v18 = vadd.f32 %v485_v17, %v454_v63  ;;  %v898_v17 = vld [vmem:[%s1047_s21 + $0xc] ss:$0 sm:$0xff] }
 0x566   : > { %881 = vst [vmem:[%s1043_s20 + $0x8] sm:$0xff] %v486_v18 }
 0x56d   : > { %v882_v19 = vld [vmem:[%s1043_s20 + $0x9] ss:$0 sm:$0xff] }
 0x56e   : > { %v512_v20 = vmul.f32 %v882_v19, %v486_v18  ;;  %v494_v21 = vmul.f32 %v882_v19, %v882_v19 }
 0x570   : > { %513 = vadd.xlane.f32.xlu2 %v512_v20  ;;  %495 = vadd.xlane.f32.xlu1 %v494_v21 }
 0x5e3   : > { %v496_v24 = vpop.xlane.xlu1 %495  ;;  %v514_v30 = vpop.xlane.xlu2 %513 }
 0x5e4   : > { %v497_v25 = vsub.f32 %v883_v22, %v496_v24  ;;  %v515_v33 = vsub.f32 %v1057_v23, %v514_v30 }
 0x5e6   : > { %967 = vrsqrt.f32 %v497_v25  ;;  %vm504_vm14 = vweird.f32 %v497_v25 }
 0x5ec   : > { %v968_v26 = vpop.eup %967 }
 0x5ed   : > { %v499_v27 = vmul.f32 %v968_v26, %v497_v25  ;;  %vm505_vm11 = vweird.f32 %v968_v26 }
 0x5ee   : > { %vm506_vm15 = vmor %vm504_vm14, %vm505_vm11  ;;  %vm557_vm11 = vcmask 97368  }
 0x5ef   : > { %v500_v28 = vmul.f32 %v968_v26, %v499_v27 }
 0x5f1   : > { %v501_v29 = vmul.f32 0.5, %v500_v28 }
 0x5f3   : > { %v502_v31 = vsub.f32 1.5, %v501_v29 }
 0x5f5   : > { %v503_v32 = vmul.f32 %v968_v26, %v502_v31 }
 0x5f7   : > { %v507_v34 = vsel %vm506_vm15, %v968_v26, %v503_v32  ;;  %vm586_vm15 = vmand %vm557_vm11, %vm263_vm2 }
 0x5f8   : > { %v516_v35 = vmul.f32 %v515_v33, %v507_v34 }
 0x5fa   : > { %v519_v36 = vsel %vm518_vm1, %v516_v35, 0.0  ;;  %vm591_vm1 = vcmask 105568  }
 0x5fb   : > { %v520_v37 = vadd.f32 %v519_v36, %v486_v18  ;;  %v903_v36 = vld [vmem:[%s1047_s21 + $0xd] ss:$0 sm:$0xff] }
 0x5fd   : > { %886 = vst [vmem:[%s1043_s20 + $0x8] sm:$0xff] %v520_v37 }
 0x604   : > { %v887_v38 = vld [vmem:[%s1043_s20 + $0xa] ss:$0 sm:$0xff] }
 0x605   : > { %v546_v39 = vmul.f32 %v887_v38, %v520_v37  ;;  %v528_v40 = vmul.f32 %v887_v38, %v887_v38 }
 0x607   : > { %547 = vadd.xlane.f32.xlu1 %v546_v39  ;;  %529 = vadd.xlane.f32.xlu0 %v528_v40 }
 0x67a   : > { %v530_v43 = vpop.xlane.xlu0 %529  ;;  %v548_v50 = vpop.xlane.xlu1 %547 }
 0x67b   : > { %v531_v44 = vsub.f32 %v888_v41, %v530_v43  ;;  %v549_v53 = vsub.f32 %v1057_v23, %v548_v50 }
 0x67d   : > { %969 = vrsqrt.f32 %v531_v44  ;;  %vm538_vm5 = vweird.f32 %v531_v44 }
 0x683   : > { %v970_v45 = vpop.eup %969 }
 0x684   : > { %v533_v47 = vmul.f32 %v970_v45, %v531_v44  ;;  %vm539_vm6 = vweird.f32 %v970_v45 }
 0x685   : > { %vm540_vm7 = vmor %vm538_vm5, %vm539_vm6 }
 0x686   : > { %v534_v48 = vmul.f32 %v970_v45, %v533_v47  ;;  %vm620_vm5 = vmand %vm591_vm1, %vm307_vm9 }
 0x688   : > { %v535_v49 = vmul.f32 0.5, %v534_v48 }
 0x68a   : > { %v536_v51 = vsub.f32 1.5, %v535_v49 }
 0x68c   : > { %v537_v52 = vmul.f32 %v970_v45, %v536_v51 }
 0x68e   : > { %v541_v54 = vsel %vm540_vm7, %v970_v45, %v537_v52  ;;  %vm625_vm7 = vcmask 113768  }
 0x68f   : > { %v550_v55 = vmul.f32 %v549_v53, %v541_v54  ;;  %vm654_vm11 = vmand %vm625_vm7, %vm351_vm0  ;;  %vm439_vm0 = vcmask 1047559  }
 0x691   : > { %v553_v56 = vsel %vm552_vm10, %v550_v55, 0.0 }
 0x692   : > { %v554_v57 = vadd.f32 %v553_v56, %v520_v37  ;;  %v434_v56 = vmul.f32 %v1103_v46, %v1098_v42 }
 0x694   : > { %891 = vst [vmem:[%s1043_s20 + $0x8] sm:$0xff] %v554_v57 }
 0x69b   : > { %v892_v58 = vld [vmem:[%s1043_s20 + $0xb] ss:$0 sm:$0xff] }
 0x69c   : > { %v580_v59 = vmul.f32 %v892_v58, %v554_v57  ;;  %v562_v61 = vmul.f32 %v892_v58, %v892_v58 }
 0x69e   : > { %581 = vadd.xlane.f32.xlu0 %v580_v59  ;;  %563 = vadd.xlane.f32.xlu2 %v562_v61 }
 0x711   : > { %v564_v63 = vpop.xlane.xlu2 %563  ;;  %v582_v5 = vpop.xlane.xlu0 %581 }
 0x712   : > { %v565_v0 = vsub.f32 %v893_v62, %v564_v63  ;;  %v583_v8 = vsub.f32 %v1057_v23, %v582_v5 }
 0x714   : > { %971 = vrsqrt.f32 %v565_v0  ;;  %vm572_vm13 = vweird.f32 %v565_v0 }
 0x71a   : > { %v972_v1 = vpop.eup %971 }
 0x71b   : > { %v567_v2 = vmul.f32 %v972_v1, %v565_v0  ;;  %vm573_vm12 = vweird.f32 %v972_v1 }
 0x71c   : > { %vm574_vm14 = vmor %vm572_vm13, %vm573_vm12 }
 0x71d   : > { %v568_v3 = vmul.f32 %v972_v1, %v567_v2  ;;  %vm440_vm13 = vmand %vm413_vm3, %vm439_vm0  ;;  %vm659_vm3 = vcmask 121968  }
 0x71e   : > { %vm688_vm1 = vmand %vm659_vm3, %vm395_vm8 }
 0x71f   : > { %v569_v4 = vmul.f32 0.5, %v568_v3 }
 0x721   : > { %v570_v6 = vsub.f32 1.5, %v569_v4 }
 0x723   : > { %v571_v7 = vmul.f32 %v972_v1, %v570_v6 }
 0x725   : > { %v575_v9 = vsel %vm574_vm14, %v972_v1, %v571_v7 }
 0x726   : > { %v584_v10 = vmul.f32 %v583_v8, %v575_v9 }
 0x728   : > { %v587_v11 = vsel %vm586_vm15, %v584_v10, 0.0 }
 0x729   : > { %v588_v12 = vadd.f32 %v587_v11, %v554_v57  ;;  %v908_v57 = vld [vmem:[%s1047_s21 + $0xe] ss:$0 sm:$0xff] }
 0x72b   : > { %896 = vst [vmem:[%s1043_s20 + $0x8] sm:$0xff] %v588_v12 }
 0x732   : > { %v897_v13 = vld [vmem:[%s1043_s20 + $0xc] ss:$0 sm:$0xff] }
 0x733   : > { %v614_v15 = vmul.f32 %v897_v13, %v588_v12  ;;  %v596_v16 = vmul.f32 %v897_v13, %v897_v13  ;;  %v913_v13 = vld [vmem:[%s1047_s21 + $0xf] ss:$0 sm:$0xff] }
 0x735   : > { %615 = vadd.xlane.f32.xlu2 %v614_v15  ;;  %597 = vadd.xlane.f32.xlu1 %v596_v16 }
 0x7a8   : > { %v598_v18 = vpop.xlane.xlu1 %597  ;;  %v616_v25 = vpop.xlane.xlu2 %615 }
 0x7a9   : > { %v599_v19 = vsub.f32 %v898_v17, %v598_v18  ;;  %v617_v28 = vsub.f32 %v1057_v23, %v616_v25 }
 0x7ab   : > { %973 = vrsqrt.f32 %v599_v19  ;;  %vm606_vm6 = vweird.f32 %v599_v19 }
 0x7b1   : > { %v974_v20 = vpop.eup %973 }
 0x7b2   : > { %v601_v21 = vmul.f32 %v974_v20, %v599_v19  ;;  %vm607_vm2 = vweird.f32 %v974_v20 }
 0x7b3   : > { %vm608_vm4 = vmor %vm606_vm6, %vm607_vm2  ;;  %vm693_vm6 = vcmask 130168  }
 0x7b4   : > { %v602_v22 = vmul.f32 %v974_v20, %v601_v21 }
 0x7b6   : > { %v603_v24 = vmul.f32 0.5, %v602_v22 }
 0x7b8   : > { %v604_v26 = vsub.f32 1.5, %v603_v24 }
 0x7ba   : > { %v605_v27 = vmul.f32 %v974_v20, %v604_v26 }
 0x7bc   : > { %v609_v29 = vsel %vm608_vm4, %v974_v20, %v605_v27 }
 0x7bd   : > { %v618_v30 = vmul.f32 %v617_v28, %v609_v29 }
 0x7bf   : > { %v621_v31 = vsel %vm620_vm5, %v618_v30, 0.0 }
 0x7c0   : > { %v622_v32 = vadd.f32 %v621_v31, %v588_v12 }
 0x7c2   : > { %901 = vst [vmem:[%s1043_s20 + $0x8] sm:$0xff] %v622_v32 }
 0x7c9   : > { %v902_v33 = vld [vmem:[%s1043_s20 + $0xd] ss:$0 sm:$0xff] }
 0x7ca   : > { %v648_v34 = vmul.f32 %v902_v33, %v622_v32  ;;  %v630_v35 = vmul.f32 %v902_v33, %v902_v33 }
 0x7cc   : > { %649 = vadd.xlane.f32.xlu1 %v648_v34  ;;  %631 = vadd.xlane.f32.xlu0 %v630_v35 }
 0x83f   : > { %v632_v37 = vpop.xlane.xlu0 %631  ;;  %v650_v44 = vpop.xlane.xlu1 %649 }
 0x840   : > { %v633_v38 = vsub.f32 %v903_v36, %v632_v37  ;;  %v651_v48 = vsub.f32 %v1057_v23, %v650_v44 }
 0x842   : > { %975 = vrsqrt.f32 %v633_v38  ;;  %vm640_vm10 = vweird.f32 %v633_v38 }
 0x848   : > { %v976_v39 = vpop.eup %975 }
 0x849   : > { %v635_v40 = vmul.f32 %v976_v39, %v633_v38  ;;  %vm641_vm9 = vweird.f32 %v976_v39 }
 0x84a   : > { %vm642_vm12 = vmor %vm640_vm10, %vm641_vm9 }
 0x84b   : > { %v636_v41 = vmul.f32 %v976_v39, %v635_v40  ;;  %vm722_vm9 = vmand %vm693_vm6, %vm439_vm0 }
 0x84d   : > { %v637_v43 = vmul.f32 0.5, %v636_v41 }
 0x84f   : > { %v638_v45 = vsub.f32 1.5, %v637_v43 }
 0x851   : > { %v639_v47 = vmul.f32 %v976_v39, %v638_v45 }
 0x853   : > { %v643_v49 = vsel %vm642_vm12, %v976_v39, %v639_v47 }
 0x854   : > { %v652_v50 = vmul.f32 %v651_v48, %v643_v49 }
 0x856   : > { %v655_v51 = vsel %vm654_vm11, %v652_v50, 0.0 }
 0x857   : > { %v656_v52 = vadd.f32 %v655_v51, %v622_v32 }
 0x859   : > { %906 = vst [vmem:[%s1043_s20 + $0x8] sm:$0xff] %v656_v52 }
 0x860   : > { %v907_v53 = vld [vmem:[%s1043_s20 + $0xe] ss:$0 sm:$0xff] }
 0x861   : > { %v682_v54 = vmul.f32 %v907_v53, %v656_v52  ;;  %v664_v55 = vmul.f32 %v907_v53, %v907_v53 }
 0x863   : > { %683 = vadd.xlane.f32.xlu0 %v682_v54  ;;  %665 = vadd.xlane.f32.xlu2 %v664_v55 }
 0x86b   : > { %435 = vadd.xlane.f32.xlu2 %v434_v56 }
 0x8d6   : > { %v666_v58 = vpop.xlane.xlu2 %665 }
 0x8d7   : > { %v667_v59 = vsub.f32 %v908_v57, %v666_v58 }
 0x8d9   : > { %977 = vrsqrt.f32 %v667_v59  ;;  %vm674_vm15 = vweird.f32 %v667_v59 }
 0x8de   : > { %v436_v61 = vpop.xlane.xlu2 %435 }
 0x8df   : > { %v978_v62 = vpop.eup %977  ;;  %v437_v63 = vsub.f32 %v1051_v14, %v436_v61  ;;  %v684_v14 = vpop.xlane.xlu0 %683 }
 0x8e0   : > { %v669_v0 = vmul.f32 %v978_v62, %v667_v59  ;;  %vm675_vm14 = vweird.f32 %v978_v62  ;;  %v685_v6 = vsub.f32 %v1057_v23, %v684_v14 }
 0x8e1   : > { %v438_v1 = vmul.f32 %v437_v63, %v1110_v60  ;;  %vm676_vm2 = vmor %vm674_vm15, %vm675_vm14 }
 0x8e2   : > { %v670_v2 = vmul.f32 %v978_v62, %v669_v0 }
 0x8e3   : > { %v441_v46 = vsel %vm440_vm13, %v438_v1, 0.0 }
 0x8e4   : > { %v671_v3 = vmul.f32 0.5, %v670_v2  ;;  %v442_v4 = vadd.f32 %v441_v46, %v1098_v42 }
 0x8e6   : > { %v672_v5 = vsub.f32 1.5, %v671_v3  ;;  %443 = vst [vmem:[%s1043_s20] sm:$0xff] %v442_v4 }
 0x8e7   : > { %767 = vst [vmem:[%s1156_s25] sm:$0xff] %v442_v4 }
 0x8e8   : > { %v673_v60 = vmul.f32 %v978_v62, %v672_v5 }
 0x8ea   : > { %v677_v7 = vsel %vm676_vm2, %v978_v62, %v673_v60 }
 0x8eb   : > { %v686_v8 = vmul.f32 %v685_v6, %v677_v7 }
 0x8ed   : > { %v689_v9 = vsel %vm688_vm1, %v686_v8, 0.0 }
 0x8ee   : > { %v690_v42 = vadd.f32 %v689_v9, %v656_v52 }
 0x8f0   : > { %911 = vst [vmem:[%s1043_s20 + $0x8] sm:$0xff] %v690_v42 }
 0x8f7   : > { %v912_v10 = vld [vmem:[%s1043_s20 + $0xf] ss:$0 sm:$0xff] }
 0x8f8   : > { %v716_v11 = vmul.f32 %v912_v10, %v690_v42  ;;  %v698_v12 = vmul.f32 %v912_v10, %v912_v10 }
 0x8fa   : > { %717 = vadd.xlane.f32.xlu0 %v716_v11  ;;  %699 = vadd.xlane.f32.xlu1 %v698_v12 }
 0x96d   : > { %v700_v15 = vpop.xlane.xlu1 %699  ;;  %v718_v21 = vpop.xlane.xlu0 %717 }
 0x96e   : > { %v701_v16 = vsub.f32 %v913_v13, %v700_v15  ;;  %v719_v25 = vsub.f32 %v1057_v23, %v718_v21 }
 0x970   : > { %979 = vrsqrt.f32 %v701_v16  ;;  %vm708_vm4 = vweird.f32 %v701_v16 }
 0x976   : > { %v980_v17 = vpop.eup %979 }
 0x977   : > { %v703_v18 = vmul.f32 %v980_v17, %v701_v16  ;;  %vm709_vm8 = vweird.f32 %v980_v17 }
 0x978   : > { %vm710_vm5 = vmor %vm708_vm4, %vm709_vm8 }
 0x979   : > { %v704_v19 = vmul.f32 %v980_v17, %v703_v18 }
 0x97b   : > { %v705_v20 = vmul.f32 0.5, %v704_v19 }
 0x97d   : > { %v706_v22 = vsub.f32 1.5, %v705_v20 }
 0x97f   : > { %v707_v24 = vmul.f32 %v980_v17, %v706_v22 }
 0x981   : > { %v711_v26 = vsel %vm710_vm5, %v980_v17, %v707_v24 }
 0x982   : > { %v720_v27 = vmul.f32 %v719_v25, %v711_v26 }
 0x984   : > { %v723_v28 = vsel %vm722_vm9, %v720_v27, 0.0 }
 0x985   : > { %v724_v29 = vadd.f32 %v723_v28, %v690_v42 }
 0x987   : > { %916 = vst [vmem:[%s1043_s20 + $0x8] sm:$0xff] %v724_v29 }
 0x988   : > { %769 = vst [vmem:[%s1156_s25 + $0x8] sm:$0xff] %v724_v29 }
 0x989 PF: > { %s7_s8 = sadd.s32 1, %s1003_s8   ;;  %s1181_s6 = smov %s999_s7 }
 0x98a   : > { %p4_p5 = scmp.ge.s32.totalorder %s7_s8, 4   ;;  %s1182_s7 = smov %s1184_s10 }
 0x98c   :  { %6 = sbr.rel (!%p4_p5) target bundleno = 2 (0x2), region = 197 }

// kernel: custom-call.7
= control target key start
LH: loop header
LB: loop body
LE: loop exit
PB: predicated region body
PF: predicated region fallthrough
CT: control target
= control target key end

     0   :  { %s606_s6 = smov 0   ;;  %s608_s7 = smov 0   ;;  %s709_s0 = inlined_call_operand.vmem [shape: f32[2,1,16,16], index: 0, kind: input, shape index: {}]   ;;  %s710_s1 = inlined_call_operand.vmem [shape: f32[2,1,16,16], index: 1, kind: output, shape index: {}]  }
   0x1   :  { %s610_s8 = smov 0  }
   0x2 LB: > { %s522_s9 = sadd.s32 4294967295, %s592_s8   ;;  %s33_s10 = sadd.s32 1, %s588_s7  ;;  %s592_s8 = sphi %s610_s8, %s7_s8   ;;  %s588_s7 = sphi %s608_s7, %s712_s7   ;;  %s584_s6 = sphi %s606_s6, %s711_s6  }
   0x3   : > { %p35_p0 = scmp.ge.s32.totalorder %s33_s10, 2  ;;  %p524_p1 = scmp.ge.s32.totalorder %s592_s8, 2 }
   0x4   : > { %s49_s11 = sand.u32 (!%p524_p1), 1, %s592_s8   ;;  %s538_s12 = sshll.u32 (!%p524_p1), %s588_s7, 4 }
   0x5   : > { %s714_s10 = smov (%p35_p0, %s33_s10), 0  ;;  %47 = sbr.rel (%p524_p1) target bundleno = 13 (0xd), region = 16 }
   0x6   : > { %s525_s13 = sshll.u32 (!%p524_p1), %s49_s11, 4  ;;  %s58_s16 = scalar_lea.vmem (!%p524_p1), %s709_s0, %s538_s12 }
   0x7   : > { %s51_s17 = scalar_lea.vmem (!%p524_p1), [#allocation0], %s525_s13 }
   0xa   : > { %v89_v0 = vld [vmem:[%s58_s16] sm:$0xff]  ;;  %v91_v1 = vld [vmem:[%s58_s16 + $0x8] sm:$0xff] }
   0xb   : > { %90 = vst [vmem:[%s51_s17] sm:$0xff] %v89_v0 }
   0xc   : > { %92 = vst [vmem:[%s51_s17 + $0x8] sm:$0xff] %v91_v1 }
   0xd PF: > { %p528_p2 = scmp.ge.s32.totalorder %s592_s8, 1  ;;  %p97_p3 = scmp.lt.s32.totalorder %s592_s8, 3 }
   0xf   : > { %p98_p4 = pnand %p528_p2, %p97_p3 }
  0x11   : > { %101 = sbr.rel (%p98_p4) target bundleno = 1962 (0x7aa), region = 54 }
  0x16   : > { %s104_s18 = sand.u32 1, %s522_s9   ;;  %v115_v2 = vlaneseq  ;;  %v594_v20 = vmov -1.0   ;;  %v595_v63 = vmov 0.0   ;;  %s539_s21 = sshll.u32 %s584_s6, 4 }
  0x17   : > { %s529_s19 = sshll.u32 %s104_s18, 4  ;;  %s421_s24 = scalar_lea.vmem %s710_s1, %s539_s21 }
  0x18   : > { %v633_v3 = vand.u32 127, %v115_v2  ;;  %v119_v4 = vshrl.u32 %v115_v2, 7  ;;  %s635_s20 = scalar_lea.vmem [#allocation0], %s529_s19 }
  0x19   : > { %v122_v5 = vld [vmem:[%s635_s20] sm:$0xff]  ;;  %v531_v42 = vld [vmem:[%s635_s20 + $0x8] sm:$0xff] }
  0x1a   : > { %vm121_vm0 = vcmp.eq.s32.totalorder %v119_v4, %v633_v3  ;;  %vm117_vm1 = vcmp.lt.s32.totalorder %v633_v3, 16  ;;  %vm126_vm2 = vcmp.ge.s32.totalorder %v119_v4, %v633_v3  ;;  %vm182_vm8 = vcmp.eq.s32.totalorder %v633_v3, 0 }
  0x1b   : > { %v123_v6 = vsel %vm121_vm0, %v122_v5, 0.0  ;;  %vm127_vm3 = vmand %vm126_vm2, %vm117_vm1  ;;  %vm179_vm9 = vcmp.eq.s32.totalorder %v633_v3, %v119_v4  ;;  %v183_v21 = vsel %vm182_vm8, 1.0, %v594_v20  ;;  %vm197_vm10 = vcmp.eq.s32.totalorder %v633_v3, 1 }
  0x1c   : > { %124 = vadd.xlane.f32.xlu0 %v123_v6  ;;  %v128_v15 = vsel %vm127_vm3, %v122_v5, 0.0  ;;  %v184_v22 = vsel %vm179_vm9, %v183_v21, 0.0  ;;  %vm207_vm11 = vcmp.eq.s32.totalorder %v633_v3, 2  ;;  %vm217_vm12 = vcmp.eq.s32.totalorder %v633_v3, 3 }
  0x1d   : > { %v149_v41 = vadd.s32 8, %v119_v4  ;;  %vm227_vm14 = vcmp.eq.s32.totalorder %v633_v3, 4  ;;  %vm237_vm8 = vcmp.eq.s32.totalorder %v633_v3, 5  ;;  %vm257_vm9 = vcmp.eq.s32.totalorder %v633_v3, 7 }
  0x1f   : > { %vm150_vm13 = vcmp.eq.s32.totalorder %v149_v41, %v633_v3  ;;  %vm155_vm15 = vcmp.ge.s32.totalorder %v149_v41, %v633_v3 }
  0x20   : > { %v152_v43 = vsel %vm150_vm13, %v531_v42, 0.0  ;;  %vm156_vm3 = vmand %vm155_vm15, %vm117_vm1  ;;  %vm247_vm1 = vcmp.eq.s32.totalorder %v633_v3, 6  ;;  %vm309_vm13 = vcmp.eq.s32.totalorder %v633_v3, 11  ;;  %vm337_vm15 = vcmp.eq.s32.totalorder %v633_v3, 13 }
  0x21   : > { %v157_v58 = vsel %vm156_vm3, %v531_v42, 0.0  ;;  %vm365_vm3 = vcmp.eq.s32.totalorder %v633_v3, 15 }
  0x8f   : > { %v639_v7 = vpop.xlane.xlu0 %124 }
  0x90   : > { %566 = vrcp.f32 %v639_v7  ;;  %v140_v11 = vand.u32 2147483648, %v639_v7  ;;  %v138_v13 = vand.u32 2147483647, %v639_v7  ;;  %vm134_vm5 = vweird.f32 %v639_v7 }
  0x92   : > { %v141_v16 = vor.u32 1.1754944e-38, %v140_v11  ;;  %vm139_vm7 = vcmp.eq.f32.partialorder %v138_v13, 8.507059e+37 }
  0x96   : > { %v567_v8 = vpop.eup %566 }
  0x97   : > { %v130_v9 = vmul.f32 %v567_v8, %v639_v7  ;;  %vm135_vm4 = vweird.f32 %v567_v8 }
  0x98   : > { %vm136_vm6 = vmor %vm134_vm5, %vm135_vm4 }
  0x99   : > { %v131_v10 = vsub.f32 1.0, %v130_v9 }
  0x9b   : > { %v132_v12 = vmul.f32 %v567_v8, %v131_v10 }
  0x9d   : > { %v133_v14 = vadd.f32 %v567_v8, %v132_v12 }
  0x9f   : > { %v137_v17 = vsel %vm136_vm6, %v567_v8, %v133_v14 }
  0xa0   : > { %v652_v18 = vsel %vm139_vm7, %v141_v16, %v137_v17  ;;  %vm190_vm7 = vcmp.eq.s32.totalorder %v633_v3, %v149_v41 }
  0xa1   : > { %v143_v19 = vmul.f32 %v652_v18, %v128_v15  ;;  %v191_v0 = vsel %vm190_vm7, -1.0, %v595_v63 }
  0xa3   : > { %144 = vst [vmem:[#allocation2] sm:$0xff] %v143_v19 }
  0xaa   : > { %v193_v23 = vld [vmem:[#allocation2 + $0x1] ss:$0 sm:$0xff]  ;;  %v203_v26 = vld [vmem:[#allocation2 + $0x2] ss:$0 sm:$0xff]  ;;  %v213_v31 = vld [vmem:[#allocation2 + $0x3] ss:$0 sm:$0xff] }
  0xab   : > { %v194_v24 = vxor.u32 2147483648, %v193_v23  ;;  %v204_v28 = vxor.u32 2147483648, %v203_v26  ;;  %v214_v33 = vxor.u32 2147483648, %v213_v31  ;;  %v223_v36 = vld [vmem:[#allocation2 + $0x4] ss:$0 sm:$0xff] }
  0xac   : > { %v224_v38 = vxor.u32 2147483648, %v223_v36  ;;  %v233_v44 = vld [vmem:[#allocation2 + $0x5] ss:$0 sm:$0xff]  ;;  %v243_v62 = vld [vmem:[#allocation2 + $0x6] ss:$0 sm:$0xff] }
  0xad   : > { %v198_v25 = vmul.f32 %v194_v24, %v184_v22  ;;  %v234_v46 = vxor.u32 2147483648, %v233_v44  ;;  %v244_v4 = vxor.u32 2147483648, %v243_v62  ;;  %v253_v10 = vld [vmem:[#allocation2 + $0x7] ss:$0 sm:$0xff] }
  0xae   : > { %v254_v12 = vxor.u32 2147483648, %v253_v10 }
  0xaf   : > { %199 = vadd.xlane.f32.xlu0 %v198_v25 }
 0x122   : > { %v200_v27 = vpop.xlane.xlu0 %199 }
 0x123   : > { %v201_v29 = vsel %vm197_vm10, %v200_v27, %v184_v22  ;;  %vm267_vm10 = vcmp.eq.s32.totalorder %v633_v3, 8 }
 0x124   : > { %v208_v30 = vmul.f32 %v204_v28, %v201_v29 }
 0x126   : > { %209 = vadd.xlane.f32.xlu1 %v208_v30 }
 0x199   : > { %v210_v32 = vpop.xlane.xlu1 %209 }
 0x19a   : > { %v211_v34 = vsel %vm207_vm11, %v210_v32, %v201_v29  ;;  %vm281_vm11 = vcmp.eq.s32.totalorder %v633_v3, 9 }
 0x19b   : > { %v218_v35 = vmul.f32 %v214_v33, %v211_v34 }
 0x19d   : > { %219 = vadd.xlane.f32.xlu1 %v218_v35 }
 0x1a5   : > { %153 = vadd.xlane.f32.xlu1 %v152_v43 }
 0x210   : > { %v220_v37 = vpop.xlane.xlu1 %219 }
 0x211   : > { %v221_v39 = vsel %vm217_vm12, %v220_v37, %v211_v34  ;;  %vm295_vm12 = vcmp.eq.s32.totalorder %v633_v3, 10 }
 0x212   : > { %v228_v40 = vmul.f32 %v224_v38, %v221_v39 }
 0x214   : > { %229 = vadd.xlane.f32.xlu2 %v228_v40 }
 0x218   : > { %v663_v49 = vpop.xlane.xlu1 %153 }
 0x219   : > { %568 = vrcp.f32 %v663_v49  ;;  %v169_v52 = vand.u32 2147483648, %v663_v49  ;;  %vm163_vm0 = vweird.f32 %v663_v49  ;;  %v167_v54 = vand.u32 2147483647, %v663_v49 }
 0x21b   : > { %v170_v56 = vor.u32 1.1754944e-38, %v169_v52  ;;  %vm168_vm6 = vcmp.eq.f32.partialorder %v167_v54, 8.507059e+37 }
 0x21f   : > { %v569_v50 = vpop.eup %568 }
 0x220   : > { %v159_v51 = vmul.f32 %v569_v50, %v663_v49  ;;  %vm164_vm2 = vweird.f32 %v569_v50 }
 0x221   : > { %vm165_vm4 = vmor %vm163_vm0, %vm164_vm2  ;;  %vm351_vm2 = vcmp.eq.s32.totalorder %v633_v3, 14 }
 0x222   : > { %v160_v53 = vsub.f32 1.0, %v159_v51 }
 0x224   : > { %v161_v55 = vmul.f32 %v569_v50, %v160_v53 }
 0x226   : > { %v162_v57 = vadd.f32 %v569_v50, %v161_v55 }
 0x228   : > { %v166_v59 = vsel %vm165_vm4, %v569_v50, %v162_v57 }
 0x229   : > { %v675_v60 = vsel %vm168_vm6, %v170_v56, %v166_v59 }
 0x22a   : > { %v172_v61 = vmul.f32 %v675_v60, %v157_v58 }
 0x22c   : > { %173 = vst [vmem:[#allocation2 + $0x8] sm:$0xff] %v172_v61 }
 0x233   : > { %v263_v1 = vld [vmem:[#allocation2 + $0x8] ss:$0 sm:$0xff]  ;;  %v277_v19 = vld [vmem:[#allocation2 + $0x9] ss:$0 sm:$0xff]  ;;  %v291_v27 = vld [vmem:[#allocation2 + $0xa] ss:$0 sm:$0xff] }
 0x234   : > { %v264_v5 = vxor.u32 2147483648, %v263_v1  ;;  %v278_v21 = vxor.u32 2147483648, %v277_v19  ;;  %v292_v29 = vxor.u32 2147483648, %v291_v27  ;;  %v305_v35 = vld [vmem:[#allocation2 + $0xb] ss:$0 sm:$0xff] }
 0x235   : > { %v306_v37 = vxor.u32 2147483648, %v305_v35  ;;  %v319_v43 = vld [vmem:[#allocation2 + $0xc] ss:$0 sm:$0xff]  ;;  %v333_v52 = vld [vmem:[#allocation2 + $0xd] ss:$0 sm:$0xff] }
 0x236   : > { %v272_v9 = vmul.f32 %v264_v5, %v191_v0  ;;  %v334_v54 = vxor.u32 2147483648, %v333_v52  ;;  %v347_v61 = vld [vmem:[#allocation2 + $0xe] ss:$0 sm:$0xff] }
 0x237   : > { %v348_v63 = vxor.u32 2147483648, %v347_v61 }
 0x238   : > { %273 = vadd.xlane.f32.xlu1 %v272_v9 }
 0x287   : > { %v230_v45 = vpop.xlane.xlu2 %229 }
 0x288   : > { %v231_v47 = vsel %vm227_vm14, %v230_v45, %v221_v39  ;;  %v320_v45 = vxor.u32 2147483648, %v319_v43  ;;  %vm323_vm14 = vcmp.eq.s32.totalorder %v633_v3, 12 }
 0x289   : > { %v238_v48 = vmul.f32 %v234_v46, %v231_v47 }
 0x28b   : > { %239 = vadd.xlane.f32.xlu2 %v238_v48 }
 0x2ab   : > { %v274_v20 = vpop.xlane.xlu1 %273 }
 0x2ac   : > { %v275_v22 = vsel %vm267_vm10, %v274_v20, %v191_v0 }
 0x2ad   : > { %v286_v23 = vmul.f32 %v278_v21, %v275_v22 }
 0x2fe   : > { %v240_v2 = vpop.xlane.xlu2 %239 }
 0x2ff   : > { %v241_v6 = vsel %vm237_vm8, %v240_v2, %v231_v47 }
 0x300   : > { %v248_v8 = vmul.f32 %v244_v4, %v241_v6 }
 0x302   : > { %249 = vadd.xlane.f32.xlu0 %v248_v8 }
 0x375   : > { %v250_v11 = vpop.xlane.xlu0 %249 }
 0x376   : > { %v251_v13 = vsel %vm247_vm1, %v250_v11, %v241_v6  ;;  %v361_v6 = vld [vmem:[#allocation2 + $0xf] ss:$0 sm:$0xff] }
 0x377   : > { %v258_v14 = vmul.f32 %v254_v12, %v251_v13  ;;  %v362_v9 = vxor.u32 2147483648, %v361_v6 }
 0x379   : > { %259 = vadd.xlane.f32.xlu2 %v258_v14 }
 0x3ec   : > { %v260_v15 = vpop.xlane.xlu2 %259 }
 0x3ed   : > { %v261_v16 = vsel %vm257_vm9, %v260_v15, %v251_v13 }
 0x3ee   : > { %v268_v17 = vmul.f32 %v264_v5, %v261_v16 }
 0x3f0   : > { %269 = vadd.xlane.f32.xlu0 %v268_v17 }
 0x3f8   : > { %287 = vadd.xlane.f32.xlu0 %v286_v23 }
 0x463   : > { %v270_v24 = vpop.xlane.xlu0 %269 }
 0x464   : > { %v271_v25 = vsel %vm267_vm10, %v270_v24, %v261_v16 }
 0x465   : > { %v282_v26 = vmul.f32 %v278_v21, %v271_v25 }
 0x467   : > { %283 = vadd.xlane.f32.xlu2 %v282_v26 }
 0x46b   : > { %v288_v28 = vpop.xlane.xlu0 %287 }
 0x46c   : > { %v289_v30 = vsel %vm281_vm11, %v288_v28, %v275_v22 }
 0x46d   : > { %v300_v31 = vmul.f32 %v292_v29, %v289_v30 }
 0x46f   : > { %301 = vadd.xlane.f32.xlu2 %v300_v31 }
 0x4da   : > { %v284_v32 = vpop.xlane.xlu2 %283 }
 0x4db   : > { %v285_v33 = vsel %vm281_vm11, %v284_v32, %v271_v25 }
 0x4dc   : > { %v296_v34 = vmul.f32 %v292_v29, %v285_v33 }
 0x4de   : > { %297 = vadd.xlane.f32.xlu1 %v296_v34 }
 0x4e2   : > { %v302_v36 = vpop.xlane.xlu2 %301 }
 0x4e3   : > { %v303_v38 = vsel %vm295_vm12, %v302_v36, %v289_v30 }
 0x4e4   : > { %v314_v39 = vmul.f32 %v306_v37, %v303_v38 }
 0x4e6   : > { %315 = vadd.xlane.f32.xlu1 %v314_v39 }
 0x551   : > { %v298_v40 = vpop.xlane.xlu1 %297 }
 0x552   : > { %v299_v41 = vsel %vm295_vm12, %v298_v40, %v285_v33 }
 0x553   : > { %v310_v42 = vmul.f32 %v306_v37, %v299_v41 }
 0x555   : > { %311 = vadd.xlane.f32.xlu0 %v310_v42 }
 0x559   : > { %v316_v44 = vpop.xlane.xlu1 %315 }
 0x55a   : > { %v317_v46 = vsel %vm309_vm13, %v316_v44, %v303_v38 }
 0x55b   : > { %v328_v47 = vmul.f32 %v320_v45, %v317_v46 }
 0x55d   : > { %329 = vadd.xlane.f32.xlu0 %v328_v47 }
 0x5c8   : > { %v312_v48 = vpop.xlane.xlu0 %311 }
 0x5c9   : > { %v313_v50 = vsel %vm309_vm13, %v312_v48, %v299_v41 }
 0x5ca   : > { %v324_v51 = vmul.f32 %v320_v45, %v313_v50 }
 0x5cc   : > { %325 = vadd.xlane.f32.xlu2 %v324_v51 }
 0x5d0   : > { %v330_v53 = vpop.xlane.xlu0 %329 }
 0x5d1   : > { %v331_v55 = vsel %vm323_vm14, %v330_v53, %v317_v46 }
 0x5d2   : > { %v342_v56 = vmul.f32 %v334_v54, %v331_v55 }
 0x5d4   : > { %343 = vadd.xlane.f32.xlu2 %v342_v56 }
 0x63f   : > { %v326_v57 = vpop.xlane.xlu2 %325 }
 0x640   : > { %v327_v58 = vsel %vm323_vm14, %v326_v57, %v313_v50 }
 0x641   : > { %v338_v59 = vmul.f32 %v334_v54, %v327_v58 }
 0x643   : > { %339 = vadd.xlane.f32.xlu1 %v338_v59 }
 0x647   : > { %v344_v62 = vpop.xlane.xlu2 %343 }
 0x648   : > { %v345_v0 = vsel %vm337_vm15, %v344_v62, %v331_v55 }
 0x649   : > { %v356_v1 = vmul.f32 %v348_v63, %v345_v0 }
 0x64b   : > { %357 = vadd.xlane.f32.xlu1 %v356_v1 }
 0x6b6   : > { %v340_v2 = vpop.xlane.xlu1 %339 }
 0x6b7   : > { %v341_v4 = vsel %vm337_vm15, %v340_v2, %v327_v58 }
 0x6b8   : > { %v352_v5 = vmul.f32 %v348_v63, %v341_v4 }
 0x6ba   : > { %353 = vadd.xlane.f32.xlu0 %v352_v5 }
 0x6be   : > { %v358_v8 = vpop.xlane.xlu1 %357 }
 0x6bf   : > { %v359_v10 = vsel %vm351_vm2, %v358_v8, %v345_v0 }
 0x6c0   : > { %v370_v11 = vmul.f32 %v362_v9, %v359_v10 }
 0x6c2   : > { %371 = vadd.xlane.f32.xlu0 %v370_v11 }
 0x72d   : > { %v354_v12 = vpop.xlane.xlu0 %353 }
 0x72e   : > { %v355_v13 = vsel %vm351_vm2, %v354_v12, %v341_v4 }
 0x72f   : > { %v366_v14 = vmul.f32 %v362_v9, %v355_v13 }
 0x731   : > { %367 = vadd.xlane.f32.xlu2 %v366_v14 }
 0x735   : > { %v372_v15 = vpop.xlane.xlu0 %371 }
 0x736   : > { %v373_v16 = vsel %vm365_vm3, %v372_v15, %v359_v10 }
 0x737   : > { %v406_v17 = vmul.f32 %v373_v16, %v675_v60 }
 0x739   : > { %v408_v19 = vsel %vm163_vm0, %v373_v16, %v406_v17 }
 0x73a   : > { %455 = vst [vmem:[%s421_s24 + $0x8] sm:$0xff] %v408_v19 }
 0x7a4   : > { %v368_v20 = vpop.xlane.xlu2 %367 }
 0x7a5   : > { %v369_v21 = vsel %vm365_vm3, %v368_v20, %v355_v13 }
 0x7a6   : > { %v388_v22 = vmul.f32 %v369_v21, %v652_v18 }
 0x7a8   : > { %v390_v3 = vsel %vm134_vm5, %v369_v21, %v388_v22 }
 0x7a9   : > { %453 = vst [vmem:[%s421_s24] sm:$0xff] %v390_v3 }
 0x7aa PF: > { %s7_s8 = sadd.s32 1, %s592_s8   ;;  %s711_s6 = smov %s588_s7 }
 0x7ab   : > { %p4_p5 = scmp.ge.s32.totalorder %s7_s8, 4   ;;  %s712_s7 = smov %s714_s10 }
 0x7ad   :  { %6 = sbr.rel (!%p4_p5) target bundleno = 2 (0x2), region = 136 }

// kernel: gp_vfe_varying_noise.1
= control target key start
LH: loop header
LB: loop body
LE: loop exit
PB: predicated region body
PF: predicated region fallthrough
CT: control target
= control target key end

     0   :  { %10 = vsyncpa [#allocation4], 0  ;;  %s1055_s0 = inlined_call_operand.hbm [shape: f32[2,16,256], index: 0, kind: input, shape index: {}]   ;;  %s1056_s1 = inlined_call_operand.vmem [shape: f32[2,3,256], index: 1, kind: input, shape index: {}]   ;;  %s1057_s2 = inlined_call_operand.vmem [shape: f32[2,1,16,16], index: 2, kind: output, shape index: {0}]   ;;  %s1058_s3 = inlined_call_operand.vmem [shape: f32[2,1,1,16], index: 3, kind: output, shape index: {1}]   ;;  %s1059_s4 = inlined_call_operand.vmem [shape: f32[2,1,3,128], index: 4, kind: output, shape index: {2}]  }
   0x1   :  { %12 = vsyncpa [#allocation4 + $0x1], 0  ;;  %s942_s15 = smov 0   ;;  %s944_s16 = smov 0  }
   0x2   :  { %s946_s17 = smov 0   ;;  %s948_s18 = smov 0  }
   0x3   :  { %s950_s19 = smov 0   ;;  %s952_s20 = smov 0  }
   0x4 LB: > { %s749_s21 = sadd.s32 4294967295, %s912_s20   ;;  %s37_s22 = sadd.s32 1, %s908_s19  ;;  %s912_s20 = sphi %s952_s20, %s18_s20   ;;  %s908_s19 = sphi %s950_s19, %s1066_s19   ;;  %s904_s18 = sphi %s948_s18, %s1065_s18   ;;  %s900_s17 = sphi %s946_s17, %s1064_s17   ;;  %s896_s16 = sphi %s944_s16, %s1063_s16   ;;  %s892_s15 = sphi %s942_s15, %s1062_s15  }
   0x5   : > { %p39_p0 = scmp.ge.s32.totalorder %s37_s22, 2  ;;  %s52_s23 = sadd.s32 1, %s900_s17 }
   0x6   : > { %p59_p1 = scmp.ne.s32.totalorder %s900_s17, %s896_s16  ;;  %p60_p2 = scmp.eq.s32.totalorder %s912_s20, 0 }
   0x7   : > { %s1068_s22 = smov (%p39_p0, %s37_s22), 0  ;;  %p65_p4 = scmp.ne.s32.totalorder %s896_s16, %s892_s15 }
   0x8   : > { %p978_p3 = por %p60_p2, %p59_p1  ;;  %s47_s25 = ssub.s32 %s908_s19, %s1068_s22 }
   0x9   : > { %p66_p5 = scmp.eq.s32.totalorder %s749_s21, 0  ;;  %p50_p6 = scmp.eq.s32.totalorder %s47_s25, 0 }
   0xa   : > { %p776_p8 = scmp.lt.s32.totalorder %s912_s20, 2  ;;  %s207_s28 = sand.u32 1, %s900_s17  }
   0xb   : > { %p985_p7 = por %p66_p5, %p65_p4  ;;  %s767_s29 = sshll.u32 %s908_s19, 5 }
   0xc   : > { %s991_s27 = scalar_select %p50_p6, %s900_s17, %s52_s23  }
   0xd   : > { %s753_s30 = sshll.u32 %s207_s28, 5  ;;  %s221_s7 = scalar_lea.hbm %s1055_s0, %s767_s29 }
   0xe   : > { %s222_s8 = sshll.u32 %s221_s7, 4  ;;  %s211_s9 = scalar_lea.vmem [#allocation3], %s753_s30  ;;  %s223_s8 = int_to_ptr.hbm [resolvable:$true] %s222_s8 }
   0xf   : > { %s224_s10 = sshll.u32 %s211_s9, 4  ;;  %p773_p9 = pnand %p776_p8, %p978_p3  ;;  %s225_s10 = int_to_ptr.vmem [resolvable:$true] %s224_s10 }
  0x10   : > { %p756_p10 = scmp.ge.s32.totalorder %s912_s20, 1  ;;  %p251_p11 = scmp.lt.s32.totalorder %s912_s20, 3 }
  0x11   : > { %s208_s11 = scalar_lea.sflag [#allocation4], %s207_s28  ;;  %s914_s12 = smov 256  }
  0x12   : > { %s915_s13 = smov 16   ;;  %p252_p12 = pnand %p756_p10, %p251_p11 }
  0x13   : > { %775 = dma.hbm_to_vmem [thread:$0]  (!%p773_p9), %s223_s8, 512, %s225_s10, %s208_s11, %s914_s12, %s914_s12, %s915_s13  }
  0x14   : > { %255 = sbr.rel (%p252_p12) target bundleno = 198 (0xc6), region = 28  ;;  %s257_s14 = sand.u32 (!%p252_p12), 1, %s896_s16  }
  0x15   : > { %s757_s15 = sshll.u32 (!%p252_p12), %s257_s14, 5  ;;  %s258_s21 = scalar_lea.sflag (!%p252_p12), [#allocation4], %s257_s14 }
  0x16   : > { %s261_s23 = scalar_lea.vmem (!%p252_p12), [#allocation3], %s757_s15 }
  0x19   : > { %887 = dma.done.wait (%p985_p7), %s258_s21, 512  }
  0x1a   : > { %889 = vsyncadd (%p985_p7), %s258_s21, 4294966784  ;;  %p324_p13 = scmp.lt.s32.totalorder %s904_s18, 1  ;;  %v916_v0 = vmov 0.0   ;;  %v370_v1 = vld [vmem:[%s261_s23 + $0x10] sm:$0xff]  ;;  %v371_v2 = vld [vmem:[%s261_s23 + $0x18] sm:$0xff]  ;;  %vm523_vm4 = vcmask 1040384  }
  0x1b   : > { %367 = vst [vmem:[#allocation2] sm:$0x77] %v916_v0  ;;  %417 = vmatpush.xpose.msra.mxu0 %v370_v1  ;;  %440 = vmatpush.xpose.msra.mxu1 %v371_v2  ;;  %v368_v4 = vld [vmem:[%s261_s23] sm:$0xff]  ;;  %v369_v5 = vld [vmem:[%s261_s23 + $0x8] sm:$0xff]  ;;  %vm526_vm5 = vcmask 1041408   ;;  %vm532_vm6 = vcmask 1043456  }
  0x1c   : > { %s1070_s18 = smov (!%p324_p13, %s904_s18), 1  ;;  %474 = vmatpush.xpose.msra.mxu2 %v370_v1  ;;  %494 = vmatpush.xpose.msra.mxu3 %v371_v2  ;;  %vm547_vm7 = vcmask 1042432   ;;  %vm362_vm8 = vcmask 130048   ;;  %vm365_vm9 = vcmask 122880  }
  0x1d   : > { %s768_s24 = sshll.u32 %s1070_s18, 3  ;;  %s769_s26 = sshll.u32 %s1070_s18, 4 }
  0x1e   : > { %s331_s29 = scalar_lea.vmem %s1056_s1, %s768_s24  ;;  %s344_s6 = scalar_lea.vmem %s1057_s2, %s769_s26 }
  0x1f   : > { %v763_v3 = vld [vmem:[%s331_s29 + $0x1] ss:$4 sm:$0x3]  ;;  %418 = vmatpush.xpose.msra.mxu0 %v368_v4  ;;  %441 = vmatpush.xpose.msra.mxu1 %v369_v5  ;;  %v764_v15 = vld [vmem:[%s331_s29 + $0x2] ss:$4 sm:$0x3]  ;;  %s350_s9 = scalar_lea.vmem %s1058_s3, %s1070_s18 }
  0x20   : > { %828 = vrcp.f32 %v763_v3  ;;  %475 = vmatpush.xpose.msra.mxu2 %v368_v4  ;;  %495 = vmatpush.xpose.msra.mxu3 %v369_v5  ;;  %v388_v8 = vand.u32 2147483648, %v763_v3  ;;  %vm382_vm0 = vweird.f32 %v763_v3  ;;  %v386_v10 = vand.u32 2147483647, %v763_v3  ;;  %v372_v16 = vld [vmem:[%s331_s29] ss:$4 sm:$0x3] }
  0x21   : > { %830 = vlog2.f32 %v763_v3  ;;  %363 = vst.msk [vmem:[%s344_s6] sm:$0xff] %vm362_vm8, %v916_v0  ;;  %s762_s10 = sshll.u32 %s1070_s18, 2 }
  0x22   : > { %v389_v12 = vor.u32 1.1754944e-38, %v388_v8  ;;  %vm387_vm3 = vcmp.eq.f32.partialorder %v386_v10, 8.507059e+37  ;;  %v503_v41 = vld [vmem:[#allocation2] sm:$0x77]  ;;  %364 = vst.msk [vmem:[%s344_s6 + $0x8] sm:$0xff] %vm362_vm8, %v916_v0  ;;  %s357_s13 = scalar_lea.vmem %s1059_s4, %s762_s10 }
  0x23   : > { %366 = vst.msk [vmem:[%s350_s9] sm:$0x1] %vm365_vm9, %v916_v0 }
  0x26   : > { %v829_v6 = vpop.eup %828 }
  0x27   : > { %v378_v7 = vmul.f32 %v829_v6, %v763_v3  ;;  %vm383_vm1 = vweird.f32 %v829_v6  ;;  %v831_v13 = vpop.eup %830 }
  0x28   : > { %vm384_vm2 = vmor %vm382_vm0, %vm383_vm1  ;;  %v506_v19 = vmul.f32 0.6931472, %v831_v13  ;;  %v401_v52 = vld [vmem:[%s344_s6] sm:$0xff] }
  0x29   : > { %v379_v9 = vsub.f32 1.0, %v378_v7  ;;  %v402_v60 = vld [vmem:[%s344_s6 + $0x8] sm:$0xff] }
  0x2a   : > { %v514_v26 = vperm.slane %v506_v19, 0  ;;  %v515_v29 = vperm.slane %v506_v19, 1  ;;  %v454_v57 = vld [vmem:[%s350_s9] sm:$0x1] }
  0x2b   : > { %v380_v11 = vmul.f32 %v829_v6, %v379_v9 }
  0x2d   : > { %v381_v14 = vadd.f32 %v829_v6, %v380_v11 }
  0x2f   : > { %v385_v17 = vsel %vm384_vm2, %v829_v6, %v381_v14 }
  0x30   : > { %v390_v18 = vsel %vm387_vm3, %v389_v12, %v385_v17 }
  0x31   : > { %v392_v20 = vperm.slane %v390_v18, 0  ;;  %v507_v21 = vmul.f32 %v764_v15, %v390_v18  ;;  %v393_v22 = vperm.slane %v390_v18, 1  ;;  %v400_v23 = vmul.f32 %v390_v18, %v372_v16 }
  0x33   : > { %v396_v24 = vmul.f32 %v392_v20, %v368_v4  ;;  %v397_v25 = vmul.f32 %v393_v22, %v369_v5  ;;  %v456_v27 = vperm.slane %v400_v23, 0  ;;  %v504_v28 = vmul.f32 %v400_v23, %v372_v16 }
  0x34   : > { %v457_v30 = vperm.slane %v400_v23, 1  ;;  %v519_v31 = vperm.slane %v507_v21, 0  ;;  %v520_v32 = vperm.slane %v507_v21, 1  ;;  %v398_v39 = vmul.f32 %v392_v20, %v370_v1 }
  0x35   : > { %419 = vmatmul.f32.vlgmr.msra.gmra.mxu0 %v396_v24  ;;  %442 = vmatmul.f32.vlgmr.msra.gmra.mxu1 %v397_v25  ;;  %v509_v33 = vperm.slane %v504_v28, 0  ;;  %v510_v34 = vperm.slane %v504_v28, 1  ;;  %v399_v40 = vmul.f32 %v393_v22, %v371_v2 }
  0x36   : > { %476 = vmatmul.f32.vlgmr.msra.gmra.mxu2 %v456_v27  ;;  %496 = vmatmul.f32.vlgmr.msra.gmra.mxu3 %v457_v30 }
  0x37   : > { %v524_v35 = vsel %vm523_vm4, %v509_v33, %v514_v26  ;;  %v525_v36 = vsel %vm523_vm4, %v510_v34, %v515_v29 }
  0x38   : > { %v527_v37 = vsel %vm526_vm5, %v524_v35, %v519_v31  ;;  %v528_v38 = vsel %vm526_vm5, %v525_v36, %v520_v32 }
  0x39   : > { %v531_v42 = vrot.slane %v528_v38, 4 }
  0x3b   : > { %v533_v43 = vsel %vm532_vm6, %v527_v37, %v531_v42 }
  0x3c   : > { %v535_v44 = vadd.f32 %v533_v43, %v503_v41 }
  0x3d   : > { %422 = vmatmul.f32.gmra.mxu0 %v398_v39  ;;  %445 = vmatmul.f32.gmra.mxu1 %v399_v40 }
  0x3e   : > { %536 = vst [vmem:[#allocation2] sm:$0x77] %v535_v44 }
  0x45   : > { %v540_v45 = vld [vmem:[#allocation2] sm:$0x77] }
  0x46   : > { %542 = vst [vmem:[#allocation1] ss:$2 sm:$0xff] %v540_v45 }
  0x4d   : > { %v543_v46 = vld.sshfl [vmem:[#allocation1] sm:$0xff pattern:$0x75316420]  ;;  %v544_v47 = vld.sshfl [vmem:[#allocation1 + $0x8] sm:$0xff pattern:$0x75316420] }
  0x4e   : > { %v548_v48 = vsel %vm547_vm7, %v543_v46, 0.0  ;;  %v549_v49 = vsel %vm547_vm7, %v544_v47, 0.0 }
  0x4f   : > { %v550_v50 = vadd.f32 %v549_v49, %v548_v48 }
  0x51   : > { %551 = vadd.xlane.f32.xlu0 %v550_v50 }
  0xb2   : > { %v420_v51 = vpop.f32.mrf.mxu0  ;;  %v443_v53 = vpop.f32.mrf.mxu1 }
  0xb3   : > { %v444_v54 = vadd.f32 %v443_v53, %v420_v51 }
  0xb5   : > { %v449_v55 = vadd.f32 %v444_v54, %v401_v52 }
  0xb7   : > { %452 = vst.msk [vmem:[%s344_s6] sm:$0xff] %vm362_vm8, %v449_v55 }
  0xb9   : > { %v477_v56 = vpop.f32.mrf.mxu2  ;;  %v497_v58 = vpop.f32.mrf.mxu3 }
  0xba   : > { %v423_v59 = vpop.f32.mrf.mxu0  ;;  %v446_v61 = vpop.f32.mrf.mxu1  ;;  %v498_v62 = vadd.f32 %v497_v58, %v477_v56 }
  0xbb   : > { %v447_v63 = vadd.f32 %v446_v61, %v423_v59 }
  0xbc   : > { %v500_v1 = vadd.f32 %v498_v62, %v454_v57 }
  0xbd   : > { %v450_v2 = vadd.f32 %v447_v63, %v402_v60 }
  0xbe   : > { %502 = vst.msk [vmem:[%s350_s9] sm:$0x1] %vm365_vm9, %v500_v1 }
  0xbf   : > { %453 = vst.msk [vmem:[%s344_s6 + $0x8] sm:$0xff] %vm362_vm8, %v450_v2 }
  0xc4   : > { %v552_v0 = vpop.xlane.xlu0 %551 }
  0xc5   : > { %553 = vst [vmem:[%s357_s13] sm:$0x7] %v552_v0 }
  0xc6 PF: > { %s18_s20 = sadd.s32 1, %s912_s20   ;;  %s1062_s15 = smov %s896_s16 }
  0xc7   : > { %p15_p0 = scmp.ge.s32.totalorder %s18_s20, 4   ;;  %s1063_s16 = smov %s900_s17 }
  0xc8   : > { %s1064_s17 = smov %s991_s27  ;;  %s1065_s18 = smov %s908_s19 }
  0xc9   : > { %s1066_s19 = smov %s1068_s22  ;;  %17 = sbr.rel (!%p15_p0) target bundleno = 4 (0x4), region = 105 }
  0xce   :  { %621 = vsyncpa [#allocation4], 1 }
  0xcf   :  { %623 = vsyncpa [#allocation4 + $0x1], 1 }

</bundles_post_ra>
